<compile_context>
chip_gen: v5e
topology: v5e:2x2
jax: 0.10.0
libtpu: 0.0.40
codegen_flags: <defaults>
</compile_context>

<pallas_src>
import jax
import jax.numpy as jnp
from jax.experimental import pallas as pl
from jax.experimental.pallas import tpu as pltpu

# ----------------------------- config ---------------------------------------
B, C, H, W = 2, 3, 16, 16     # batch of query/key images
HW = H * W
DIM_MLP1 = 64                 # backbone feature dim (encoder.fc.in_features)
DIM_MLP2 = 128                # MLP hidden dim (4096 in the paper)
DIM = 32                      # output embedding dim (256 in the paper)
KP = 128                      # padded im2col dim: C*9 = 27 lanes + 1 bias lane
DP = 128                      # padded embedding dim (DIM = 32 -> 128)
BIAS_LANE = C * 9             # patch lane carrying a constant 1.0 (conv bias)
M0 = 0.999                    # momentum base
WORLD_SIZE = 1                # hvd.size() == 1 (single device)
BN_EPS = 1e-5
M_STEP = M0 ** (B * WORLD_SIZE / 512.0)

_VMEM = pl.BlockSpec(memory_space=pltpu.MemorySpace.VMEM)
_SMEM = pl.BlockSpec(memory_space=pltpu.MemorySpace.SMEM)


# ----------------------------- fused kernel ----------------------------------
def fused_byol_kernel(patches_ref, pool_ref, cw_ref, ws_ref, vecs_ref,
                      loss_ref, q_scr, k_scr):
    """Whole BYOL forward: fused conv, one GAP, 3 MLP heads, loss.

    patches: [2B*HW, KP] bf16  raw uint8 values, lane BIAS_LANE == 1.0
             rows [0 : B*HW] from im_q, rows [B*HW : 2B*HW] from im_k
    pool   : [2B, 2B*HW] bf16  global-average-pool matrix (identity order)
    cw     : [KP, 2F]    bf16  online conv | target conv (1/255 + bias folded)
    ws     : [6,128,128] bf16  [w1_o, w2_o, w1_t, w2_t, w1_pred, w2_pred]
             (w1_o has zero rows F:2F, w1_t zero rows 0:F, so each head sees
              only its own encoder's lanes of the fused feature)
    vecs   : [12,128]    f32   b1,g1,be1,b2 for online / target / predictor
    """
    patches = patches_ref[...]

    # Fused conv for BOTH encoders + ReLU (bias arrives via the 1.0 lane).
    h = jnp.maximum(
        jnp.dot(patches, cw_ref[...], preferred_element_type=jnp.float32), 0.0)

    # ONE global average pool: [2B, 2F]; lanes 0:F online feats, F:2F target
    # feats; rows in image order [im_q ; im_k].
    feat = jnp.dot(pool_ref[...], h.astype(jnp.bfloat16),
                   preferred_element_type=jnp.float32)

    # Hoisted BN branch mask: stats are computed per B-row image batch, which
    # matches the reference running each image batch through a head in a
    # separate call.  Same shape for all three heads, built once.
    first = jax.lax.broadcasted_iota(jnp.int32, (2 * B, DIM_MLP2), 0) < B
    inv = 1.0 / B

    def head(x, widx, vrow):
        # Linear -> BatchNorm1d (training-mode, per B-row branch) -> ReLU -> Linear
        w1 = ws_ref[widx]
        w2 = ws_ref[widx + 1]
        b1 = vecs_ref[pl.ds(vrow, 1), :]
        g = vecs_ref[pl.ds(vrow + 1, 1), :]
        be = vecs_ref[pl.ds(vrow + 2, 1), :]
        b2 = vecs_ref[pl.ds(vrow + 3, 1), :]
        hh = jnp.dot(x.astype(jnp.bfloat16), w1,
                     preferred_element_type=jnp.float32) + b1
        mu = jnp.where(
            first,
            jnp.sum(jnp.where(first, hh, 0.0), axis=0, keepdims=True),
            jnp.sum(jnp.where(first, 0.0, hh), axis=0, keepdims=True)) * inv
        d = hh - mu
        d2 = d * d
        var = jnp.where(
            first,
            jnp.sum(jnp.where(first, d2, 0.0), axis=0, keepdims=True),
            jnp.sum(jnp.where(first, 0.0, d2), axis=0, keepdims=True)) * inv
        r = jnp.maximum(d * jax.lax.rsqrt(var + BN_EPS) * g + be, 0.0)
        return jnp.dot(r.astype(jnp.bfloat16), w2,
                       preferred_element_type=jnp.float32) + b2

    z_o = head(feat, 0, 0)        # online encoder head -> [online(q); online(k)]
    q = head(z_o, 4, 8)           # predictor           -> [q1 ; q2]
    k = head(feat, 2, 4)          # target encoder head -> [k2 ; k1]

    def l2n(v):                   # F.normalize(p=2, dim=-1, eps=1e-12)
        ss = jnp.sum(v * v, axis=-1, keepdims=True)
        return v * jax.lax.rsqrt(jnp.maximum(ss, 1e-24))    # EUP rsqrt path

    q_scr[...] = l2n(q)
    k_scr[...] = l2n(k)
    # Pair q1<->k1 and q2<->k2 via sublane-offset half reads from the scratch
    # refs (replaces the old pool_t / second GAP matmul).
    s = (jnp.sum(q_scr[pl.ds(0, B), :] * k_scr[pl.ds(B, B), :]) +
         jnp.sum(q_scr[pl.ds(B, B), :] * k_scr[pl.ds(0, B), :]))
    # loss = mean_B[(2 - 2 cos(q1,k1)) + (2 - 2 cos(q2,k2))]
    loss_ref[0, 0] = (2.0 * (2 * B) - 2.0 * s) * (1.0 / B)


def byol_fused(patches, pool, cw_cat, w_stack, vecs):
    out = pl.pallas_call(
        fused_byol_kernel,
        out_shape=jax.ShapeDtypeStruct((1, 1), jnp.float32),
        in_specs=[_VMEM] * 5,
        out_specs=_SMEM,
        scratch_shapes=[pltpu.VMEM((2 * B, DP), jnp.float32),
                        pltpu.VMEM((2 * B, DP), jnp.float32)],
    )(patches, pool, cw_cat, w_stack, vecs)
    return out[0, 0]


# ----------------------------- glue (plain JAX) -------------------------------
def extract_patches(imgs_u8):
    """im2col for 3x3 conv, stride 1, pad 1: [N,C,H,W] u8 -> [N*HW, KP] bf16.

    Lane BIAS_LANE carries a constant 1.0 so the conv bias rides inside the
    conv weight matrix (no separate bias add over the big activation).
    TODO(synk): at real image sizes build the im2col inside the kernel from
    the raw padded image to avoid the patch-DMA inflation + wrapper ops.
    """
    n = imgs_u8.shape[0]
    x = imgs_u8.astype(jnp.float32)                         # raw 0..255 values
    xp = jnp.pad(x, ((0, 0), (0, 0), (1, 1), (1, 1)))
    cols = [xp[:, :, ki:ki + H, kj:kj + W] for ki in range(3) for kj in range(3)]
    p = jnp.stack(cols, axis=2)                             # [N, C, 9, H, W]
    p = p.reshape(n, C * 9, HW).transpose(0, 2, 1).reshape(n * HW, C * 9)
    p = jnp.concatenate([p, jnp.ones((n * HW, 1), jnp.float32)], axis=1)
    p = jnp.pad(p, ((0, 0), (0, KP - (C * 9 + 1))))         # lane-pad to 128
    return p.astype(jnp.bfloat16)


def make_pool(n):
    """Constant GAP matrix; built ONCE outside jit (identity image order)."""
    rows = jax.lax.broadcasted_iota(jnp.int32, (n, n * HW), 0)
    cols = jax.lax.broadcasted_iota(jnp.int32, (n, n * HW), 1) // HW
    return jnp.where(cols == rows, 1.0 / HW, 0.0).astype(jnp.bfloat16)


def assemble(online, target, predictor):
    """Master (padded-layout, f32) params -> the 3 fused kernel operands."""
    cw_cat = jnp.concatenate([online["cw"], target["cw"]], axis=1)   # [KP, 2F]
    zpad = jnp.zeros((DIM_MLP1, DIM_MLP2), jnp.float32)
    w_stack = jnp.stack([
        jnp.concatenate([online["w1"], zpad], axis=0),   # acts on lanes 0:F
        online["w2"],
        jnp.concatenate([zpad, target["w1"]], axis=0),   # acts on lanes F:2F
        target["w2"],
        predictor["w1"],
        predictor["w2"],
    ])
    vecs = jnp.concatenate(
        [online["vec"], target["vec"], predictor["vec"]], axis=0)    # [12,128]
    return cw_cat.astype(jnp.bfloat16), w_stack.astype(jnp.bfloat16), vecs


def init_params(key):
    """Masters live in kernel-ready (padded / 1/255-folded) f32 layout so the
    per-step wrapper reduces to the EMA plus a few concat/stack/cast ops."""
    ks = jax.random.split(key, 5)

    def lin(k, din, dout, pad_rows=0, pad_cols=0):
        w = jax.random.normal(k, (din, dout), jnp.float32) * 0.02
        return jnp.pad(w, ((0, pad_rows), (0, pad_cols)))

    def head_vec():
        return jnp.concatenate([
            jnp.zeros((1, DIM_MLP2), jnp.float32),   # b1
            jnp.ones((1, DIM_MLP2), jnp.float32),    # gamma
            jnp.zeros((1, DIM_MLP2), jnp.float32),   # beta
            jnp.zeros((1, DP), jnp.float32),         # b2 (DIM padded to DP)
        ], axis=0)

    conv_w = jax.random.normal(ks[0], (DIM_MLP1, C, 3, 3), jnp.float32) * 0.05
    conv_b = jnp.zeros((1, DIM_MLP1), jnp.float32)
    cw = conv_w.reshape(DIM_MLP1, C * 9).T * (1.0 / 255.0)  # fold uint8_normalize
    cw = jnp.concatenate([cw, conv_b], axis=0)              # row BIAS_LANE = bias
    cw = jnp.pad(cw, ((0, KP - (C * 9 + 1)), (0, 0)))       # [KP, F]

    enc_online = dict(
        cw=cw,
        w1=lin(ks[1], DIM_MLP1, DIM_MLP2),                  # [64, 128]
        w2=lin(ks[2], DIM_MLP2, DIM, pad_cols=DP - DIM),    # [128, 128]
        vec=head_vec(),
    )
    predictor = dict(
        w1=lin(ks[3], DIM, DIM_MLP2, pad_rows=DP - DIM),    # [128, 128]
        w2=lin(ks[4], DIM_MLP2, DIM, pad_cols=DP - DIM),    # [128, 128]
        vec=head_vec(),
    )
    # target encoder = exact copy of the online encoder, in DISTINCT buffers
    enc_target = jax.tree_util.tree_map(jnp.copy, enc_online)
    return enc_online, predictor, enc_target


def byol_step(enc_online, predictor, enc_target, pool, im_q, im_k):
    """Mirrors BYOL.forward (shuffle_bn=False, single device).

    TODO(synk): concat_all_gather / _batch_shuffle_ddp are horovod multi-host
    collectives; at WORLD_SIZE=1 / shuffle_bn=False they are identity ops.
    TODO(synk): BatchNorm running_mean/var are not tracked (the loss only
    needs training-mode batch statistics, as in the reference).
    """
    # momentum update of the target encoder (before the target pass, as in ref;
    # the online branch is unaffected, so ordering is equivalent)
    enc_target = jax.tree_util.tree_map(
        lambda t, o: t * M_STEP + o * (1.0 - M_STEP), enc_target, enc_online)

    imgs = jnp.concatenate([im_q, im_k], axis=0)            # [2B, C, H, W]
    patches = extract_patches(imgs)
    cw_cat, w_stack, vecs = assemble(enc_online, enc_target, predictor)

    loss = byol_fused(patches, pool, cw_cat, w_stack, vecs)
    return loss, enc_target


# TODO(synk): donation of enc_target is intentionally disabled; re-enable
# donate_argnums=(2,) once the target params always come from a prior step's
# output rather than an init-time copy of the online params.
byol_step_jit = jax.jit(byol_step)


# ----------------------------- main ------------------------------------------
if __name__ == "__main__":
    key = jax.random.PRNGKey(0)
    kp, kq, kk = jax.random.split(key, 3)

    enc_online, predictor, enc_target = init_params(kp)
    pool = make_pool(2 * B)                                  # constant, built once

    im_q = jax.random.randint(kq, (B, C, H, W), 0, 256, dtype=jnp.int32).astype(jnp.uint8)
    im_k = jax.random.randint(kk, (B, C, H, W), 0, 256, dtype=jnp.int32).astype(jnp.uint8)

    loss, enc_target = byol_step_jit(enc_online, predictor, enc_target, pool, im_q, im_k)
    loss = jax.block_until_ready(loss)
    assert loss.shape == () and bool(jnp.isfinite(loss)), loss
    print("KERNEL_OK")
</pallas_src>

<mosaic_0001>
module attributes {stable_mosaic.version = 11 : i64} {
  func.func @fused_byol_kernel(%arg0: memref<1024x128xbf16, #tpu.memory_space<vmem>>, %arg1: memref<4x1024xbf16, #tpu.memory_space<vmem>>, %arg2: memref<128x128xbf16, #tpu.memory_space<vmem>>, %arg3: memref<6x128x128xbf16, #tpu.memory_space<vmem>>, %arg4: memref<12x128xf32, #tpu.memory_space<vmem>>, %arg5: memref<1x1xf32, #tpu.memory_space<smem>>, %arg6: memref<4x128xf32, #tpu.memory_space<vmem>>, %arg7: memref<4x128xf32, #tpu.memory_space<vmem>>) attributes {dimension_semantics = [], scalar_prefetch = 0 : i64, scratch_operands = 2 : i64, tpu.core_type = #tpu.core_type<tc>} {
    %c0 = arith.constant 0 : index
    %c0_0 = arith.constant 0 : index
    %0 = vector.load %arg0[%c0, %c0_0] : memref<1024x128xbf16, #tpu.memory_space<vmem>>, vector<1024x128xbf16>
    %c0_1 = arith.constant 0 : index
    %c0_2 = arith.constant 0 : index
    %1 = vector.load %arg2[%c0_1, %c0_2] : memref<128x128xbf16, #tpu.memory_space<vmem>>, vector<128x128xbf16>
    %cst = arith.constant dense<0.000000e+00> : vector<1024x128xf32>
    %2 = tpu.matmul %0, %1, %cst {dimension_numbers = #tpu.dot_dimension_numbers<[1], [0], [0], [1], [0, 0, 1, 1], [], []>} : vector<1024x128xbf16>, vector<128x128xbf16>, vector<1024x128xf32> -> vector<1024x128xf32>
    %cst_3 = arith.constant 0.000000e+00 : f32
    %3 = vector.broadcast %cst_3 : f32 to vector<1024x128xf32>
    %4 = arith.maximumf %2, %3 : vector<1024x128xf32>
    %c0_4 = arith.constant 0 : index
    %c0_5 = arith.constant 0 : index
    %5 = vector.load %arg1[%c0_4, %c0_5] : memref<4x1024xbf16, #tpu.memory_space<vmem>>, vector<4x1024xbf16>
    %6 = arith.truncf %4 : vector<1024x128xf32> to vector<1024x128xbf16>
    %cst_6 = arith.constant dense<0.000000e+00> : vector<4x128xf32>
    %7 = tpu.matmul %5, %6, %cst_6 {dimension_numbers = #tpu.dot_dimension_numbers<[1], [0], [0], [1], [0, 0, 1, 1], [], []>} : vector<4x1024xbf16>, vector<1024x128xbf16>, vector<4x128xf32> -> vector<4x128xf32>
    %8 = tpu.iota {dimensions = array<i32: 0>} : vector<4x128xi32>
    %c2_i32 = arith.constant 2 : i32
    %9 = vector.broadcast %c2_i32 : i32 to vector<4x128xi32>
    %10 = arith.cmpi slt, %8, %9 : vector<4x128xi32>
    %c0_7 = arith.constant 0 : index
    %c0_8 = arith.constant 0 : index
    %c0_9 = arith.constant 0 : index
    %11 = vector.load %arg3[%c0_7, %c0_8, %c0_9] : memref<6x128x128xbf16, #tpu.memory_space<vmem>>, vector<1x128x128xbf16>
    %12 = vector.shape_cast %11 : vector<1x128x128xbf16> to vector<128x128xbf16>
    %c1 = arith.constant 1 : index
    %c0_10 = arith.constant 0 : index
    %c0_11 = arith.constant 0 : index
    %13 = vector.load %arg3[%c1, %c0_10, %c0_11] : memref<6x128x128xbf16, #tpu.memory_space<vmem>>, vector<1x128x128xbf16>
    %14 = vector.shape_cast %13 : vector<1x128x128xbf16> to vector<128x128xbf16>
    %c0_12 = arith.constant 0 : index
    %c0_13 = arith.constant 0 : index
    %15 = vector.load %arg4[%c0_12, %c0_13] : memref<12x128xf32, #tpu.memory_space<vmem>>, vector<1x128xf32>
    %c1_14 = arith.constant 1 : index
    %c0_15 = arith.constant 0 : index
    %16 = vector.load %arg4[%c1_14, %c0_15] : memref<12x128xf32, #tpu.memory_space<vmem>>, vector<1x128xf32>
    %c2 = arith.constant 2 : index
    %c0_16 = arith.constant 0 : index
    %17 = vector.load %arg4[%c2, %c0_16] : memref<12x128xf32, #tpu.memory_space<vmem>>, vector<1x128xf32>
    %c3 = arith.constant 3 : index
    %c0_17 = arith.constant 0 : index
    %18 = vector.load %arg4[%c3, %c0_17] : memref<12x128xf32, #tpu.memory_space<vmem>>, vector<1x128xf32>
    %19 = arith.truncf %7 : vector<4x128xf32> to vector<4x128xbf16>
    %cst_18 = arith.constant dense<0.000000e+00> : vector<4x128xf32>
    %20 = tpu.matmul %19, %12, %cst_18 {dimension_numbers = #tpu.dot_dimension_numbers<[1], [0], [0], [1], [0, 0, 1, 1], [], []>} : vector<4x128xbf16>, vector<128x128xbf16>, vector<4x128xf32> -> vector<4x128xf32>
    %21 = vector.broadcast %15 : vector<1x128xf32> to vector<4x128xf32>
    %22 = arith.addf %20, %21 : vector<4x128xf32>
    %cst_19 = arith.constant 0.000000e+00 : f32
    %23 = vector.broadcast %cst_19 : f32 to vector<4x128xf32>
    %24 = arith.select %10, %22, %23 : vector<4x128xi1>, vector<4x128xf32>
    %cst_20 = arith.constant dense<0.000000e+00> : vector<128xf32>
    %25 = vector.multi_reduction <add>, %24, %cst_20 [0] : vector<4x128xf32> to vector<128xf32>
    %26 = vector.shape_cast %25 : vector<128xf32> to vector<1x128xf32>
    %cst_21 = arith.constant 0.000000e+00 : f32
    %27 = vector.broadcast %cst_21 : f32 to vector<4x128xf32>
    %28 = arith.select %10, %27, %22 : vector<4x128xi1>, vector<4x128xf32>
    %cst_22 = arith.constant dense<0.000000e+00> : vector<128xf32>
    %29 = vector.multi_reduction <add>, %28, %cst_22 [0] : vector<4x128xf32> to vector<128xf32>
    %30 = vector.shape_cast %29 : vector<128xf32> to vector<1x128xf32>
    %31 = vector.shape_cast %26 : vector<1x128xf32> to vector<1x128xf32>
    %32 = vector.broadcast %31 : vector<1x128xf32> to vector<4x128xf32>
    %33 = vector.shape_cast %30 : vector<1x128xf32> to vector<1x128xf32>
    %34 = vector.broadcast %33 : vector<1x128xf32> to vector<4x128xf32>
    %35 = arith.select %10, %32, %34 : vector<4x128xi1>, vector<4x128xf32>
    %cst_23 = arith.constant 5.000000e-01 : f32
    %36 = vector.broadcast %cst_23 : f32 to vector<4x128xf32>
    %37 = arith.mulf %35, %36 : vector<4x128xf32>
    %38 = arith.subf %22, %37 : vector<4x128xf32>
    %39 = arith.mulf %38, %38 : vector<4x128xf32>
    %cst_24 = arith.constant 0.000000e+00 : f32
    %40 = vector.broadcast %cst_24 : f32 to vector<4x128xf32>
    %41 = arith.select %10, %39, %40 : vector<4x128xi1>, vector<4x128xf32>
    %cst_25 = arith.constant dense<0.000000e+00> : vector<128xf32>
    %42 = vector.multi_reduction <add>, %41, %cst_25 [0] : vector<4x128xf32> to vector<128xf32>
    %43 = vector.shape_cast %42 : vector<128xf32> to vector<1x128xf32>
    %cst_26 = arith.constant 0.000000e+00 : f32
    %44 = vector.broadcast %cst_26 : f32 to vector<4x128xf32>
    %45 = arith.select %10, %44, %39 : vector<4x128xi1>, vector<4x128xf32>
    %cst_27 = arith.constant dense<0.000000e+00> : vector<128xf32>
    %46 = vector.multi_reduction <add>, %45, %cst_27 [0] : vector<4x128xf32> to vector<128xf32>
    %47 = vector.shape_cast %46 : vector<128xf32> to vector<1x128xf32>
    %48 = vector.shape_cast %43 : vector<1x128xf32> to vector<1x128xf32>
    %49 = vector.broadcast %48 : vector<1x128xf32> to vector<4x128xf32>
    %50 = vector.shape_cast %47 : vector<1x128xf32> to vector<1x128xf32>
    %51 = vector.broadcast %50 : vector<1x128xf32> to vector<4x128xf32>
    %52 = arith.select %10, %49, %51 : vector<4x128xi1>, vector<4x128xf32>
    %cst_28 = arith.constant 5.000000e-01 : f32
    %53 = vector.broadcast %cst_28 : f32 to vector<4x128xf32>
    %54 = arith.mulf %52, %53 : vector<4x128xf32>
    %cst_29 = arith.constant 9.99999974E-6 : f32
    %55 = vector.broadcast %cst_29 : f32 to vector<4x128xf32>
    %56 = arith.addf %54, %55 : vector<4x128xf32>
    %57 = math.rsqrt %56 : vector<4x128xf32>
    %58 = arith.mulf %38, %57 : vector<4x128xf32>
    %59 = vector.broadcast %16 : vector<1x128xf32> to vector<4x128xf32>
    %60 = arith.mulf %58, %59 : vector<4x128xf32>
    %61 = vector.broadcast %17 : vector<1x128xf32> to vector<4x128xf32>
    %62 = arith.addf %60, %61 : vector<4x128xf32>
    %cst_30 = arith.constant 0.000000e+00 : f32
    %63 = vector.broadcast %cst_30 : f32 to vector<4x128xf32>
    %64 = arith.maximumf %62, %63 : vector<4x128xf32>
    %65 = arith.truncf %64 : vector<4x128xf32> to vector<4x128xbf16>
    %cst_31 = arith.constant dense<0.000000e+00> : vector<4x128xf32>
    %66 = tpu.matmul %65, %14, %cst_31 {dimension_numbers = #tpu.dot_dimension_numbers<[1], [0], [0], [1], [0, 0, 1, 1], [], []>} : vector<4x128xbf16>, vector<128x128xbf16>, vector<4x128xf32> -> vector<4x128xf32>
    %67 = vector.broadcast %18 : vector<1x128xf32> to vector<4x128xf32>
    %68 = arith.addf %66, %67 : vector<4x128xf32>
    %c4 = arith.constant 4 : index
    %c0_32 = arith.constant 0 : index
    %c0_33 = arith.constant 0 : index
    %69 = vector.load %arg3[%c4, %c0_32, %c0_33] : memref<6x128x128xbf16, #tpu.memory_space<vmem>>, vector<1x128x128xbf16>
    %70 = vector.shape_cast %69 : vector<1x128x128xbf16> to vector<128x128xbf16>
    %c5 = arith.constant 5 : index
    %c0_34 = arith.constant 0 : index
    %c0_35 = arith.constant 0 : index
    %71 = vector.load %arg3[%c5, %c0_34, %c0_35] : memref<6x128x128xbf16, #tpu.memory_space<vmem>>, vector<1x128x128xbf16>
    %72 = vector.shape_cast %71 : vector<1x128x128xbf16> to vector<128x128xbf16>
    %c8 = arith.constant 8 : index
    %c0_36 = arith.constant 0 : index
    %73 = vector.load %arg4[%c8, %c0_36] : memref<12x128xf32, #tpu.memory_space<vmem>>, vector<1x128xf32>
    %c9 = arith.constant 9 : index
    %c0_37 = arith.constant 0 : index
    %74 = vector.load %arg4[%c9, %c0_37] : memref<12x128xf32, #tpu.memory_space<vmem>>, vector<1x128xf32>
    %c10 = arith.constant 10 : index
    %c0_38 = arith.constant 0 : index
    %75 = vector.load %arg4[%c10, %c0_38] : memref<12x128xf32, #tpu.memory_space<vmem>>, vector<1x128xf32>
    %c11 = arith.constant 11 : index
    %c0_39 = arith.constant 0 : index
    %76 = vector.load %arg4[%c11, %c0_39] : memref<12x128xf32, #tpu.memory_space<vmem>>, vector<1x128xf32>
    %77 = arith.truncf %68 : vector<4x128xf32> to vector<4x128xbf16>
    %cst_40 = arith.constant dense<0.000000e+00> : vector<4x128xf32>
    %78 = tpu.matmul %77, %70, %cst_40 {dimension_numbers = #tpu.dot_dimension_numbers<[1], [0], [0], [1], [0, 0, 1, 1], [], []>} : vector<4x128xbf16>, vector<128x128xbf16>, vector<4x128xf32> -> vector<4x128xf32>
    %79 = vector.broadcast %73 : vector<1x128xf32> to vector<4x128xf32>
    %80 = arith.addf %78, %79 : vector<4x128xf32>
    %cst_41 = arith.constant 0.000000e+00 : f32
    %81 = vector.broadcast %cst_41 : f32 to vector<4x128xf32>
    %82 = arith.select %10, %80, %81 : vector<4x128xi1>, vector<4x128xf32>
    %cst_42 = arith.constant dense<0.000000e+00> : vector<128xf32>
    %83 = vector.multi_reduction <add>, %82, %cst_42 [0] : vector<4x128xf32> to vector<128xf32>
    %84 = vector.shape_cast %83 : vector<128xf32> to vector<1x128xf32>
    %cst_43 = arith.constant 0.000000e+00 : f32
    %85 = vector.broadcast %cst_43 : f32 to vector<4x128xf32>
    %86 = arith.select %10, %85, %80 : vector<4x128xi1>, vector<4x128xf32>
    %cst_44 = arith.constant dense<0.000000e+00> : vector<128xf32>
    %87 = vector.multi_reduction <add>, %86, %cst_44 [0] : vector<4x128xf32> to vector<128xf32>
    %88 = vector.shape_cast %87 : vector<128xf32> to vector<1x128xf32>
    %89 = vector.shape_cast %84 : vector<1x128xf32> to vector<1x128xf32>
    %90 = vector.broadcast %89 : vector<1x128xf32> to vector<4x128xf32>
    %91 = vector.shape_cast %88 : vector<1x128xf32> to vector<1x128xf32>
    %92 = vector.broadcast %91 : vector<1x128xf32> to vector<4x128xf32>
    %93 = arith.select %10, %90, %92 : vector<4x128xi1>, vector<4x128xf32>
    %cst_45 = arith.constant 5.000000e-01 : f32
    %94 = vector.broadcast %cst_45 : f32 to vector<4x128xf32>
    %95 = arith.mulf %93, %94 : vector<4x128xf32>
    %96 = arith.subf %80, %95 : vector<4x128xf32>
    %97 = arith.mulf %96, %96 : vector<4x128xf32>
    %cst_46 = arith.constant 0.000000e+00 : f32
    %98 = vector.broadcast %cst_46 : f32 to vector<4x128xf32>
    %99 = arith.select %10, %97, %98 : vector<4x128xi1>, vector<4x128xf32>
    %cst_47 = arith.constant dense<0.000000e+00> : vector<128xf32>
    %100 = vector.multi_reduction <add>, %99, %cst_47 [0] : vector<4x128xf32> to vector<128xf32>
    %101 = vector.shape_cast %100 : vector<128xf32> to vector<1x128xf32>
    %cst_48 = arith.constant 0.000000e+00 : f32
    %102 = vector.broadcast %cst_48 : f32 to vector<4x128xf32>
    %103 = arith.select %10, %102, %97 : vector<4x128xi1>, vector<4x128xf32>
    %cst_49 = arith.constant dense<0.000000e+00> : vector<128xf32>
    %104 = vector.multi_reduction <add>, %103, %cst_49 [0] : vector<4x128xf32> to vector<128xf32>
    %105 = vector.shape_cast %104 : vector<128xf32> to vector<1x128xf32>
    %106 = vector.shape_cast %101 : vector<1x128xf32> to vector<1x128xf32>
    %107 = vector.broadcast %106 : vector<1x128xf32> to vector<4x128xf32>
    %108 = vector.shape_cast %105 : vector<1x128xf32> to vector<1x128xf32>
    %109 = vector.broadcast %108 : vector<1x128xf32> to vector<4x128xf32>
    %110 = arith.select %10, %107, %109 : vector<4x128xi1>, vector<4x128xf32>
    %cst_50 = arith.constant 5.000000e-01 : f32
    %111 = vector.broadcast %cst_50 : f32 to vector<4x128xf32>
    %112 = arith.mulf %110, %111 : vector<4x128xf32>
    %cst_51 = arith.constant 9.99999974E-6 : f32
    %113 = vector.broadcast %cst_51 : f32 to vector<4x128xf32>
    %114 = arith.addf %112, %113 : vector<4x128xf32>
    %115 = math.rsqrt %114 : vector<4x128xf32>
    %116 = arith.mulf %96, %115 : vector<4x128xf32>
    %117 = vector.broadcast %74 : vector<1x128xf32> to vector<4x128xf32>
    %118 = arith.mulf %116, %117 : vector<4x128xf32>
    %119 = vector.broadcast %75 : vector<1x128xf32> to vector<4x128xf32>
    %120 = arith.addf %118, %119 : vector<4x128xf32>
    %cst_52 = arith.constant 0.000000e+00 : f32
    %121 = vector.broadcast %cst_52 : f32 to vector<4x128xf32>
    %122 = arith.maximumf %120, %121 : vector<4x128xf32>
    %123 = arith.truncf %122 : vector<4x128xf32> to vector<4x128xbf16>
    %cst_53 = arith.constant dense<0.000000e+00> : vector<4x128xf32>
    %124 = tpu.matmul %123, %72, %cst_53 {dimension_numbers = #tpu.dot_dimension_numbers<[1], [0], [0], [1], [0, 0, 1, 1], [], []>} : vector<4x128xbf16>, vector<128x128xbf16>, vector<4x128xf32> -> vector<4x128xf32>
    %125 = vector.broadcast %76 : vector<1x128xf32> to vector<4x128xf32>
    %126 = arith.addf %124, %125 : vector<4x128xf32>
    %c2_54 = arith.constant 2 : index
    %c0_55 = arith.constant 0 : index
    %c0_56 = arith.constant 0 : index
    %127 = vector.load %arg3[%c2_54, %c0_55, %c0_56] : memref<6x128x128xbf16, #tpu.memory_space<vmem>>, vector<1x128x128xbf16>
    %128 = vector.shape_cast %127 : vector<1x128x128xbf16> to vector<128x128xbf16>
    %c3_57 = arith.constant 3 : index
    %c0_58 = arith.constant 0 : index
    %c0_59 = arith.constant 0 : index
    %129 = vector.load %arg3[%c3_57, %c0_58, %c0_59] : memref<6x128x128xbf16, #tpu.memory_space<vmem>>, vector<1x128x128xbf16>
    %130 = vector.shape_cast %129 : vector<1x128x128xbf16> to vector<128x128xbf16>
    %c4_60 = arith.constant 4 : index
    %c0_61 = arith.constant 0 : index
    %131 = vector.load %arg4[%c4_60, %c0_61] : memref<12x128xf32, #tpu.memory_space<vmem>>, vector<1x128xf32>
    %c5_62 = arith.constant 5 : index
    %c0_63 = arith.constant 0 : index
    %132 = vector.load %arg4[%c5_62, %c0_63] : memref<12x128xf32, #tpu.memory_space<vmem>>, vector<1x128xf32>
    %c6 = arith.constant 6 : index
    %c0_64 = arith.constant 0 : index
    %133 = vector.load %arg4[%c6, %c0_64] : memref<12x128xf32, #tpu.memory_space<vmem>>, vector<1x128xf32>
    %c7 = arith.constant 7 : index
    %c0_65 = arith.constant 0 : index
    %134 = vector.load %arg4[%c7, %c0_65] : memref<12x128xf32, #tpu.memory_space<vmem>>, vector<1x128xf32>
    %135 = arith.truncf %7 : vector<4x128xf32> to vector<4x128xbf16>
    %cst_66 = arith.constant dense<0.000000e+00> : vector<4x128xf32>
    %136 = tpu.matmul %135, %128, %cst_66 {dimension_numbers = #tpu.dot_dimension_numbers<[1], [0], [0], [1], [0, 0, 1, 1], [], []>} : vector<4x128xbf16>, vector<128x128xbf16>, vector<4x128xf32> -> vector<4x128xf32>
    %137 = vector.broadcast %131 : vector<1x128xf32> to vector<4x128xf32>
    %138 = arith.addf %136, %137 : vector<4x128xf32>
    %cst_67 = arith.constant 0.000000e+00 : f32
    %139 = vector.broadcast %cst_67 : f32 to vector<4x128xf32>
    %140 = arith.select %10, %138, %139 : vector<4x128xi1>, vector<4x128xf32>
    %cst_68 = arith.constant dense<0.000000e+00> : vector<128xf32>
    %141 = vector.multi_reduction <add>, %140, %cst_68 [0] : vector<4x128xf32> to vector<128xf32>
    %142 = vector.shape_cast %141 : vector<128xf32> to vector<1x128xf32>
    %cst_69 = arith.constant 0.000000e+00 : f32
    %143 = vector.broadcast %cst_69 : f32 to vector<4x128xf32>
    %144 = arith.select %10, %143, %138 : vector<4x128xi1>, vector<4x128xf32>
    %cst_70 = arith.constant dense<0.000000e+00> : vector<128xf32>
    %145 = vector.multi_reduction <add>, %144, %cst_70 [0] : vector<4x128xf32> to vector<128xf32>
    %146 = vector.shape_cast %145 : vector<128xf32> to vector<1x128xf32>
    %147 = vector.shape_cast %142 : vector<1x128xf32> to vector<1x128xf32>
    %148 = vector.broadcast %147 : vector<1x128xf32> to vector<4x128xf32>
    %149 = vector.shape_cast %146 : vector<1x128xf32> to vector<1x128xf32>
    %150 = vector.broadcast %149 : vector<1x128xf32> to vector<4x128xf32>
    %151 = arith.select %10, %148, %150 : vector<4x128xi1>, vector<4x128xf32>
    %cst_71 = arith.constant 5.000000e-01 : f32
    %152 = vector.broadcast %cst_71 : f32 to vector<4x128xf32>
    %153 = arith.mulf %151, %152 : vector<4x128xf32>
    %154 = arith.subf %138, %153 : vector<4x128xf32>
    %155 = arith.mulf %154, %154 : vector<4x128xf32>
    %cst_72 = arith.constant 0.000000e+00 : f32
    %156 = vector.broadcast %cst_72 : f32 to vector<4x128xf32>
    %157 = arith.select %10, %155, %156 : vector<4x128xi1>, vector<4x128xf32>
    %cst_73 = arith.constant dense<0.000000e+00> : vector<128xf32>
    %158 = vector.multi_reduction <add>, %157, %cst_73 [0] : vector<4x128xf32> to vector<128xf32>
    %159 = vector.shape_cast %158 : vector<128xf32> to vector<1x128xf32>
    %cst_74 = arith.constant 0.000000e+00 : f32
    %160 = vector.broadcast %cst_74 : f32 to vector<4x128xf32>
    %161 = arith.select %10, %160, %155 : vector<4x128xi1>, vector<4x128xf32>
    %cst_75 = arith.constant dense<0.000000e+00> : vector<128xf32>
    %162 = vector.multi_reduction <add>, %161, %cst_75 [0] : vector<4x128xf32> to vector<128xf32>
    %163 = vector.shape_cast %162 : vector<128xf32> to vector<1x128xf32>
    %164 = vector.shape_cast %159 : vector<1x128xf32> to vector<1x128xf32>
    %165 = vector.broadcast %164 : vector<1x128xf32> to vector<4x128xf32>
    %166 = vector.shape_cast %163 : vector<1x128xf32> to vector<1x128xf32>
    %167 = vector.broadcast %166 : vector<1x128xf32> to vector<4x128xf32>
    %168 = arith.select %10, %165, %167 : vector<4x128xi1>, vector<4x128xf32>
    %cst_76 = arith.constant 5.000000e-01 : f32
    %169 = vector.broadcast %cst_76 : f32 to vector<4x128xf32>
    %170 = arith.mulf %168, %169 : vector<4x128xf32>
    %cst_77 = arith.constant 9.99999974E-6 : f32
    %171 = vector.broadcast %cst_77 : f32 to vector<4x128xf32>
    %172 = arith.addf %170, %171 : vector<4x128xf32>
    %173 = math.rsqrt %172 : vector<4x128xf32>
    %174 = arith.mulf %154, %173 : vector<4x128xf32>
    %175 = vector.broadcast %132 : vector<1x128xf32> to vector<4x128xf32>
    %176 = arith.mulf %174, %175 : vector<4x128xf32>
    %177 = vector.broadcast %133 : vector<1x128xf32> to vector<4x128xf32>
    %178 = arith.addf %176, %177 : vector<4x128xf32>
    %cst_78 = arith.constant 0.000000e+00 : f32
    %179 = vector.broadcast %cst_78 : f32 to vector<4x128xf32>
    %180 = arith.maximumf %178, %179 : vector<4x128xf32>
    %181 = arith.truncf %180 : vector<4x128xf32> to vector<4x128xbf16>
    %cst_79 = arith.constant dense<0.000000e+00> : vector<4x128xf32>
    %182 = tpu.matmul %181, %130, %cst_79 {dimension_numbers = #tpu.dot_dimension_numbers<[1], [0], [0], [1], [0, 0, 1, 1], [], []>} : vector<4x128xbf16>, vector<128x128xbf16>, vector<4x128xf32> -> vector<4x128xf32>
    %183 = vector.broadcast %134 : vector<1x128xf32> to vector<4x128xf32>
    %184 = arith.addf %182, %183 : vector<4x128xf32>
    %185 = arith.mulf %126, %126 : vector<4x128xf32>
    %cst_80 = arith.constant dense<0.000000e+00> : vector<4xf32>
    %186 = vector.multi_reduction <add>, %185, %cst_80 [1] : vector<4x128xf32> to vector<4xf32>
    %187 = vector.shape_cast %186 : vector<4xf32> to vector<4x1xf32>
    %cst_81 = arith.constant 1.000000e-24 : f32
    %188 = vector.broadcast %cst_81 : f32 to vector<4x1xf32>
    %189 = arith.maximumf %187, %188 : vector<4x1xf32>
    %190 = math.rsqrt %189 : vector<4x1xf32>
    %191 = vector.broadcast %190 : vector<4x1xf32> to vector<4x128xf32>
    %192 = arith.mulf %126, %191 : vector<4x128xf32>
    %c0_82 = arith.constant 0 : index
    %c0_83 = arith.constant 0 : index
    %193 = vector.load %arg6[%c0_82, %c0_83] : memref<4x128xf32, #tpu.memory_space<vmem>>, vector<4x128xf32>
    tpu.vector_store %arg6[%c0_82, %c0_83], %192 {strides = array<i32>} : memref<4x128xf32, #tpu.memory_space<vmem>>, vector<4x128xf32>,
    %194 = arith.mulf %184, %184 : vector<4x128xf32>
    %cst_84 = arith.constant dense<0.000000e+00> : vector<4xf32>
    %195 = vector.multi_reduction <add>, %194, %cst_84 [1] : vector<4x128xf32> to vector<4xf32>
    %196 = vector.shape_cast %195 : vector<4xf32> to vector<4x1xf32>
    %cst_85 = arith.constant 1.000000e-24 : f32
    %197 = vector.broadcast %cst_85 : f32 to vector<4x1xf32>
    %198 = arith.maximumf %196, %197 : vector<4x1xf32>
    %199 = math.rsqrt %198 : vector<4x1xf32>
    %200 = vector.broadcast %199 : vector<4x1xf32> to vector<4x128xf32>
    %201 = arith.mulf %184, %200 : vector<4x128xf32>
    %c0_86 = arith.constant 0 : index
    %c0_87 = arith.constant 0 : index
    %202 = vector.load %arg7[%c0_86, %c0_87] : memref<4x128xf32, #tpu.memory_space<vmem>>, vector<4x128xf32>
    tpu.vector_store %arg7[%c0_86, %c0_87], %201 {strides = array<i32>} : memref<4x128xf32, #tpu.memory_space<vmem>>, vector<4x128xf32>,
    %c0_88 = arith.constant 0 : index
    %c0_89 = arith.constant 0 : index
    %203 = vector.load %arg6[%c0_88, %c0_89] : memref<4x128xf32, #tpu.memory_space<vmem>>, vector<2x128xf32>
    %c2_90 = arith.constant 2 : index
    %c0_91 = arith.constant 0 : index
    %204 = vector.load %arg7[%c2_90, %c0_91] : memref<4x128xf32, #tpu.memory_space<vmem>>, vector<2x128xf32>
    %205 = arith.mulf %203, %204 : vector<2x128xf32>
    %206 = vector.shape_cast %205 : vector<2x128xf32> to vector<1x2x128xf32>
    %cst_92 = arith.constant dense<0.000000e+00> : vector<1xf32>
    %207 = vector.multi_reduction <add>, %206, %cst_92 [1, 2] : vector<1x2x128xf32> to vector<1xf32>
    %208 = vector.shape_cast %207 : vector<1xf32> to vector<1x1x1xf32>
    %209 = vector.extract %208[0, 0, 0] : f32 from vector<1x1x1xf32>
    %c2_93 = arith.constant 2 : index
    %c0_94 = arith.constant 0 : index
    %210 = vector.load %arg6[%c2_93, %c0_94] : memref<4x128xf32, #tpu.memory_space<vmem>>, vector<2x128xf32>
    %c0_95 = arith.constant 0 : index
    %c0_96 = arith.constant 0 : index
    %211 = vector.load %arg7[%c0_95, %c0_96] : memref<4x128xf32, #tpu.memory_space<vmem>>, vector<2x128xf32>
    %212 = arith.mulf %210, %211 : vector<2x128xf32>
    %213 = vector.shape_cast %212 : vector<2x128xf32> to vector<1x2x128xf32>
    %cst_97 = arith.constant dense<0.000000e+00> : vector<1xf32>
    %214 = vector.multi_reduction <add>, %213, %cst_97 [1, 2] : vector<1x2x128xf32> to vector<1xf32>
    %215 = vector.shape_cast %214 : vector<1xf32> to vector<1x1x1xf32>
    %216 = vector.extract %215[0, 0, 0] : f32 from vector<1x1x1xf32>
    %217 = arith.addf %209, %216 : f32
    %cst_98 = arith.constant 2.000000e+00 : f32
    %218 = arith.mulf %cst_98, %217 : f32
    %cst_99 = arith.constant 8.000000e+00 : f32
    %219 = arith.subf %cst_99, %218 : f32
    %cst_100 = arith.constant 5.000000e-01 : f32
    %220 = arith.mulf %219, %cst_100 : f32
    %c0_101 = arith.constant 0 : index
    %c0_102 = arith.constant 0 : index
    %221 = memref.load %arg5[%c0_101, %c0_102] : memref<1x1xf32, #tpu.memory_space<smem>>
    memref.store %220, %arg5[%c0_101, %c0_102] : memref<1x1xf32, #tpu.memory_space<smem>>
    return
  }
}

</mosaic_0001>

<bundles_post_ra>
// kernel: byol_step.1
= control target key start
LH: loop header
LB: loop body
LE: loop exit
PB: predicated region body
PF: predicated region fallthrough
CT: control target
= control target key end

     0   :  { %s3458_s0 = inlined_call_operand.vmem [shape: bf16[1024,128], index: 0, kind: input, shape index: {}]   ;;  %s3459_s1 = inlined_call_operand.vmem [shape: bf16[4,1024], index: 1, kind: input, shape index: {}]   ;;  %s3460_s2 = inlined_call_operand.vmem [shape: bf16[128,128], index: 2, kind: input, shape index: {}]   ;;  %s3461_s3 = inlined_call_operand.vmem [shape: bf16[6,128,128], index: 3, kind: input, shape index: {}]   ;;  %s3462_s4 = inlined_call_operand.vmem [shape: f32[12,128], index: 4, kind: input, shape index: {}]   ;;  %s3463_s5 = inlined_call_operand.hbm [shape: f32[1,1], index: 5, kind: output, shape index: {}]  }
   0x1   :  { %v2617_v0 = vld [vmem:[%s3460_s2 + $0x38] sm:$0xff]  ;;  %v2616_v1 = vld [vmem:[%s3460_s2 + $0x30] sm:$0xff]  ;;  %v2615_v2 = vld [vmem:[%s3460_s2 + $0x28] sm:$0xff] }
   0x2   :  { %597 = vmatpush.bf16.msra.mxu0 %v2617_v0  ;;  %2666 = vmatpush.bf16.msra.mxu1 %v2617_v0 }
   0x3   :  { %2668 = vmatpush.bf16.msra.mxu3 %v2617_v0  ;;  %2667 = vmatpush.bf16.msra.mxu2 %v2617_v0 }
   0x6   :  { %598 = vmatpush.bf16.msra.mxu0 %v2616_v1  ;;  %2669 = vmatpush.bf16.msra.mxu1 %v2616_v1 }
   0x7   :  { %2671 = vmatpush.bf16.msra.mxu3 %v2616_v1  ;;  %2670 = vmatpush.bf16.msra.mxu2 %v2616_v1 }
   0x8   :  { %10 = vsyncpa [#allocation5], 0  ;;  %v2614_v3 = vld [vmem:[%s3460_s2 + $0x20] sm:$0xff]  ;;  %v2613_v4 = vld [vmem:[%s3460_s2 + $0x18] sm:$0xff]  ;;  %vm1349_vm1 = vcmask 1043456   ;;  %s1976_s20 = sshll.u32 %s3463_s5, 4  ;;  %s1977_s20 = int_to_ptr.hbm [resolvable:$true] %s1976_s20 }
   0x9   :  { %v2612_v5 = vld [vmem:[%s3460_s2 + $0x10] sm:$0xff]  ;;  %v2611_v6 = vld [vmem:[%s3460_s2 + $0x8] sm:$0xff]  ;;  %v2610_v7 = vld [vmem:[%s3460_s2] sm:$0xff]  ;;  %s2731_s23 = smov [#allocation4]  }
   0xa   :  { %599 = vmatpush.bf16.msra.mxu0 %v2615_v2  ;;  %2672 = vmatpush.bf16.msra.mxu1 %v2615_v2  ;;  %v2546_v8 = vld [vmem:[%s3458_s0] sm:$0xff]  ;;  %v2569_v9 = vld [vmem:[%s3458_s0 + $0xb8] sm:$0xff]  ;;  %v2547_v10 = vld [vmem:[%s3458_s0 + $0x8] sm:$0xff] }
   0xb   :  { %2674 = vmatpush.bf16.msra.mxu3 %v2615_v2  ;;  %2673 = vmatpush.bf16.msra.mxu2 %v2615_v2  ;;  %v2570_v11 = vld [vmem:[%s3458_s0 + $0xc0] sm:$0xff]  ;;  %v2548_v13 = vld [vmem:[%s3458_s0 + $0x10] sm:$0xff]  ;;  %v2571_v14 = vld [vmem:[%s3458_s0 + $0xc8] sm:$0xff] }
   0xc   :  { %v2594_v12 = vld [vmem:[%s3458_s0 + $0x180] sm:$0xff]  ;;  %v2595_v15 = vld [vmem:[%s3458_s0 + $0x188] sm:$0xff]  ;;  %v2549_v16 = vld [vmem:[%s3458_s0 + $0x18] sm:$0xff] }
   0xd   :  { %v2572_v17 = vld [vmem:[%s3458_s0 + $0xd0] sm:$0xff]  ;;  %v2550_v19 = vld [vmem:[%s3458_s0 + $0x20] sm:$0xff]  ;;  %v2573_v20 = vld [vmem:[%s3458_s0 + $0xd8] sm:$0xff] }
   0xe   :  { %600 = vmatpush.bf16.msra.mxu0 %v2614_v3  ;;  %2675 = vmatpush.bf16.msra.mxu1 %v2614_v3  ;;  %v2596_v18 = vld [vmem:[%s3458_s0 + $0x190] sm:$0xff]  ;;  %v2597_v21 = vld [vmem:[%s3458_s0 + $0x198] sm:$0xff]  ;;  %v2551_v22 = vld [vmem:[%s3458_s0 + $0x28] sm:$0xff] }
   0xf   :  { %2677 = vmatpush.bf16.msra.mxu3 %v2614_v3  ;;  %2676 = vmatpush.bf16.msra.mxu2 %v2614_v3  ;;  %v2574_v23 = vld [vmem:[%s3458_s0 + $0xe0] sm:$0xff]  ;;  %v2552_v25 = vld [vmem:[%s3458_s0 + $0x30] sm:$0xff]  ;;  %v2575_v26 = vld [vmem:[%s3458_s0 + $0xe8] sm:$0xff] }
  0x10   :  { %v2598_v24 = vld [vmem:[%s3458_s0 + $0x1a0] sm:$0xff]  ;;  %v2599_v27 = vld [vmem:[%s3458_s0 + $0x1a8] sm:$0xff]  ;;  %v2553_v28 = vld [vmem:[%s3458_s0 + $0x38] sm:$0xff] }
  0x11   :  { %v2576_v29 = vld [vmem:[%s3458_s0 + $0xf0] sm:$0xff]  ;;  %v2554_v31 = vld [vmem:[%s3458_s0 + $0x40] sm:$0xff]  ;;  %v2577_v32 = vld [vmem:[%s3458_s0 + $0xf8] sm:$0xff] }
  0x12   :  { %601 = vmatpush.bf16.msra.mxu0 %v2613_v4  ;;  %2678 = vmatpush.bf16.msra.mxu1 %v2613_v4  ;;  %v2600_v30 = vld [vmem:[%s3458_s0 + $0x1b0] sm:$0xff]  ;;  %v2601_v35 = vld [vmem:[%s3458_s0 + $0x1b8] sm:$0xff]  ;;  %v2555_v41 = vld [vmem:[%s3458_s0 + $0x48] sm:$0xff] }
  0x13   :  { %2680 = vmatpush.bf16.msra.mxu3 %v2613_v4  ;;  %2679 = vmatpush.bf16.msra.mxu2 %v2613_v4  ;;  %v2602_v44 = vld [vmem:[%s3458_s0 + $0x1c0] sm:$0xff]  ;;  %v2556_v51 = vld [vmem:[%s3458_s0 + $0x50] sm:$0xff]  ;;  %v2603_v55 = vld [vmem:[%s3458_s0 + $0x1c8] sm:$0xff] }
  0x14   :  { %v2583_v62 = vld [vmem:[%s3458_s0 + $0x128] sm:$0xff]  ;;  %v2557_v63 = vld [vmem:[%s3458_s0 + $0x58] sm:$0xff]  ;;  %v2604_v3 = vld [vmem:[%s3458_s0 + $0x1d0] sm:$0xff] }
  0x16   :  { %602 = vmatpush.bf16.msra.mxu0 %v2612_v5  ;;  %2681 = vmatpush.bf16.msra.mxu1 %v2612_v5 }
  0x17   :  { %2683 = vmatpush.bf16.msra.mxu3 %v2612_v5  ;;  %2682 = vmatpush.bf16.msra.mxu2 %v2612_v5 }
  0x1a   :  { %603 = vmatpush.bf16.msra.mxu0 %v2611_v6  ;;  %2684 = vmatpush.bf16.msra.mxu1 %v2611_v6 }
  0x1b   :  { %2686 = vmatpush.bf16.msra.mxu3 %v2611_v6  ;;  %2685 = vmatpush.bf16.msra.mxu2 %v2611_v6 }
  0x1e   :  { %604 = vmatpush.bf16.msra.mxu0 %v2610_v7  ;;  %2687 = vmatpush.bf16.msra.mxu1 %v2610_v7 }
  0x1f   :  { %2689 = vmatpush.bf16.msra.mxu3 %v2610_v7  ;;  %2688 = vmatpush.bf16.msra.mxu2 %v2610_v7 }
  0x21   :  { %605 = vmatmul.bf16.vlgmr.msra.gmra.mxu0 %v2546_v8  ;;  %720 = vmatmul.bf16.vlgmr.msra.gmra.mxu1 %v2569_v9  ;;  %v2578_v9 = vld [vmem:[%s3458_s0 + $0x100] sm:$0xff] }
  0x22   :  { %845 = vmatmul.bf16.vlgmr.msra.gmra.mxu3 %v2594_v12  ;;  %790 = vmatmul.bf16.vlgmr.msra.gmra.mxu2 %v2583_v62  ;;  %v2558_v12 = vld [vmem:[%s3458_s0 + $0x60] sm:$0xff] }
  0x31   :  { %610 = vmatmul.bf16.gmra.mxu0 %v2547_v10  ;;  %725 = vmatmul.bf16.gmra.mxu1 %v2570_v11  ;;  %v2584_v11 = vld [vmem:[%s3458_s0 + $0x130] sm:$0xff] }
  0x32   :  { %850 = vmatmul.bf16.gmra.mxu3 %v2595_v15  ;;  %795 = vmatmul.bf16.gmra.mxu2 %v2584_v11 }
  0x41   :  { %615 = vmatmul.bf16.gmra.mxu0 %v2548_v13  ;;  %730 = vmatmul.bf16.gmra.mxu1 %v2571_v14 }
  0x42   :  { %855 = vmatmul.bf16.gmra.mxu3 %v2596_v18 }
  0x51   :  { %620 = vmatmul.bf16.gmra.mxu0 %v2549_v16  ;;  %735 = vmatmul.bf16.gmra.mxu1 %v2572_v17  ;;  %v2605_v16 = vld [vmem:[%s3458_s0 + $0x1d8] sm:$0xff] }
  0x52   :  { %860 = vmatmul.bf16.gmra.mxu3 %v2597_v21  ;;  %v2585_v21 = vld [vmem:[%s3458_s0 + $0x138] sm:$0xff] }
  0x53   :  { %800 = vmatmul.bf16.gmra.mxu2 %v2585_v21 }
  0x61   :  { %625 = vmatmul.bf16.gmra.mxu0 %v2550_v19  ;;  %740 = vmatmul.bf16.gmra.mxu1 %v2573_v20  ;;  %v2579_v20 = vld [vmem:[%s3458_s0 + $0x108] sm:$0xff] }
  0x62   :  { %865 = vmatmul.bf16.gmra.mxu3 %v2598_v24 }
  0x71   :  { %630 = vmatmul.bf16.gmra.mxu0 %v2551_v22  ;;  %745 = vmatmul.bf16.gmra.mxu1 %v2574_v23  ;;  %v2559_v22 = vld [vmem:[%s3458_s0 + $0x68] sm:$0xff] }
  0x72   :  { %870 = vmatmul.bf16.gmra.mxu3 %v2599_v27 }
  0x81   :  { %635 = vmatmul.bf16.gmra.mxu0 %v2552_v25  ;;  %750 = vmatmul.bf16.gmra.mxu1 %v2575_v26  ;;  %v2606_v26 = vld [vmem:[%s3458_s0 + $0x1e0] sm:$0xff] }
  0x82   :  { %875 = vmatmul.bf16.gmra.mxu3 %v2600_v30  ;;  %v2580_v30 = vld [vmem:[%s3458_s0 + $0x110] sm:$0xff] }
  0x91   :  { %640 = vmatmul.bf16.gmra.mxu0 %v2553_v28  ;;  %755 = vmatmul.bf16.gmra.mxu1 %v2576_v29 }
  0x92   :  { %880 = vmatmul.bf16.gmra.mxu3 %v2601_v35 }
  0x9e   :  { %v606_v33 = vpop.f32.mrf.mxu0  ;;  %v2861_v34 = vpop.f32.mrf.mxu1 }
  0x9f   :  { %v926_v38 = vmax.f32 %v606_v33, 0.0 }
  0xa1   :  { %645 = vmatmul.bf16.gmra.mxu0 %v2554_v31  ;;  %760 = vmatmul.bf16.gmra.mxu1 %v2577_v32  ;;  %v2586_v31 = vld [vmem:[%s3458_s0 + $0x140] sm:$0xff]  ;;  %v2560_v32 = vld [vmem:[%s3458_s0 + $0x70] sm:$0xff] }
  0xa2   :  { %885 = vmatmul.bf16.gmra.mxu3 %v2602_v44  ;;  %805 = vmatmul.bf16.gmra.mxu2 %v2586_v31  ;;  %v2581_v44 = vld [vmem:[%s3458_s0 + $0x118] sm:$0xff] }
  0xa5   :  { %v2880_v49 = vpop.f32.mrf.mxu3 }
  0xa6   :  { %v608_v36 = vpop.f32.mrf.mxu0  ;;  %v2866_v37 = vpop.f32.mrf.mxu1 }
  0xa7   :  { %v927_v39 = vmax.f32 %v608_v36, 0.0 }
  0xa9   :  { %v2868_v40 = vpack.c.bf16 %v927_v39, %v926_v38  ;;  %v2607_v38 = vld [vmem:[%s3458_s0 + $0x1e8] sm:$0xff] }
  0xad   :  { %v2889_v54 = vpop.f32.mrf.mxu3 }
  0xae   :  { %v611_v42 = vpop.f32.mrf.mxu0  ;;  %v2873_v43 = vpop.f32.mrf.mxu1 }
  0xaf   :  { %v928_v47 = vmax.f32 %v611_v42, 0.0 }
  0xb1   :  { %650 = vmatmul.bf16.gmra.mxu0 %v2555_v41  ;;  %765 = vmatmul.bf16.gmra.mxu1 %v2578_v9  ;;  %v2588_v9 = vld [vmem:[%s3458_s0 + $0x150] sm:$0xff] }
  0xb2   :  { %890 = vmatmul.bf16.gmra.mxu3 %v2603_v55  ;;  %v2608_v55 = vld [vmem:[%s3458_s0 + $0x1f0] sm:$0xff] }
  0xb5   :  { %v2896_v60 = vpop.f32.mrf.mxu3 }
  0xb6   :  { %v613_v45 = vpop.f32.mrf.mxu0  ;;  %v2878_v46 = vpop.f32.mrf.mxu1 }
  0xb7   :  { %v929_v48 = vmax.f32 %v613_v45, 0.0  ;;  %v2587_v45 = vld [vmem:[%s3458_s0 + $0x148] sm:$0xff] }
  0xb8   :  { %810 = vmatmul.bf16.gmra.mxu2 %v2587_v45 }
  0xb9   :  { %v2882_v50 = vpack.c.bf16 %v929_v48, %v928_v47  ;;  %v2561_v47 = vld [vmem:[%s3458_s0 + $0x78] sm:$0xff] }
  0xbd   :  { %v2908_v2 = vpop.f32.mrf.mxu3 }
  0xbe   :  { %v616_v52 = vpop.f32.mrf.mxu0  ;;  %v2887_v53 = vpop.f32.mrf.mxu1 }
  0xbf   :  { %v930_v58 = vmax.f32 %v616_v52, 0.0 }
  0xc1   :  { %655 = vmatmul.bf16.gmra.mxu0 %v2556_v51  ;;  %770 = vmatmul.bf16.gmra.mxu1 %v2579_v20  ;;  %v2562_v20 = vld [vmem:[%s3458_s0 + $0x80] sm:$0xff] }
  0xc2   :  { %895 = vmatmul.bf16.gmra.mxu3 %v2604_v3 }
  0xc5   :  { %v2915_v8 = vpop.f32.mrf.mxu3 }
  0xc6   :  { %v618_v56 = vpop.f32.mrf.mxu0  ;;  %v2894_v57 = vpop.f32.mrf.mxu1 }
  0xc7   :  { %v931_v59 = vmax.f32 %v618_v56, 0.0 }
  0xc8   :  { %815 = vmatmul.bf16.gmra.mxu2 %v2588_v9 }
  0xc9   :  { %v2898_v61 = vpack.c.bf16 %v931_v59, %v930_v58 }
  0xcd   :  { %v2932_v15 = vpop.f32.mrf.mxu3 }
  0xce   :  { %v621_v0 = vpop.f32.mrf.mxu0  ;;  %v2906_v1 = vpop.f32.mrf.mxu1 }
  0xcf   :  { %v932_v6 = vmax.f32 %v621_v0, 0.0 }
  0xd1   :  { %660 = vmatmul.bf16.gmra.mxu0 %v2557_v63  ;;  %775 = vmatmul.bf16.gmra.mxu1 %v2580_v30  ;;  %v2582_v63 = vld [vmem:[%s3458_s0 + $0x120] sm:$0xff] }
  0xd2   :  { %900 = vmatmul.bf16.gmra.mxu3 %v2605_v16 }
  0xd5   :  { %v2941_v19 = vpop.f32.mrf.mxu3 }
  0xd6   :  { %v623_v4 = vpop.f32.mrf.mxu0  ;;  %v2913_v5 = vpop.f32.mrf.mxu1 }
  0xd7   :  { %v933_v7 = vmax.f32 %v623_v4, 0.0  ;;  %v972_v4 = vmax.f32 %v2861_v34, 0.0 }
  0xd9   :  { %v2920_v10 = vpack.c.bf16 %v933_v7, %v932_v6  ;;  %v973_v6 = vmax.f32 %v2866_v37, 0.0 }
  0xdb   :  { %v1079_v21 = vpack.c.bf16 %v973_v6, %v972_v4 }
  0xdd   :  { %v2954_v25 = vpop.f32.mrf.mxu3  ;;  %1167 = vmatpush.bf16.msrb.mxu3 %v1079_v21 }
  0xde   :  { %v2928_v13 = vpop.f32.mrf.mxu0  ;;  %v2930_v14 = vpop.f32.mrf.mxu1 }
  0xdf   :  { %v934_v31 = vmax.f32 %v2928_v13, 0.0  ;;  %v2589_v13 = vld [vmem:[%s3458_s0 + $0x158] sm:$0xff]  ;;  %v980_v21 = vmax.f32 %v2930_v14, 0.0  ;;  %v977_v14 = vmax.f32 %v2894_v57, 0.0 }
  0xe0   :  { %820 = vmatmul.bf16.gmra.mxu2 %v2589_v13  ;;  %v974_v13 = vmax.f32 %v2873_v43, 0.0 }
  0xe1   :  { %665 = vmatmul.bf16.gmra.mxu0 %v2558_v12  ;;  %780 = vmatmul.bf16.gmra.mxu1 %v2581_v44 }
  0xe2   :  { %905 = vmatmul.bf16.gmra.mxu3 %v2606_v26 }
  0xe5   :  { %v2961_v29 = vpop.f32.mrf.mxu3 }
  0xe6   :  { %v2937_v17 = vpop.f32.mrf.mxu0  ;;  %v2939_v18 = vpop.f32.mrf.mxu1 }
  0xe7   :  { %v935_v26 = vmax.f32 %v2937_v17, 0.0  ;;  %v1054_v17 = vld [vmem:[%s3459_s1] sm:$0xff] }
  0xe8   :  { %1121 = vst [vmem:[#allocation1] ss:$4 sm:$0xff] %v1054_v17  ;;  %v975_v17 = vmax.f32 %v2878_v46, 0.0 }
  0xed   :  { %v2974_v36 = vpop.f32.mrf.mxu3 }
  0xee   :  { %v631_v23 = vpop.f32.mrf.mxu0  ;;  %v2952_v24 = vpop.f32.mrf.mxu1 }
  0xef   :  { %v936_v34 = vmax.f32 %v631_v23, 0.0  ;;  %v1125_v9 = vld.sshfl [vmem:[#allocation1] sm:$0xff pattern:$0x73625140] }
  0xf1   :  { %670 = vmatmul.bf16.gmra.mxu0 %v2559_v22  ;;  %785 = vmatmul.bf16.gmra.mxu1 %v2582_v63 }
  0xf2   :  { %910 = vmatmul.bf16.gmra.mxu3 %v2607_v38 }
  0xf5   :  { %v2981_v42 = vpop.f32.mrf.mxu3 }
  0xf6   :  { %v633_v27 = vpop.f32.mrf.mxu0  ;;  %v2959_v28 = vpop.f32.mrf.mxu1 }
  0xf7   :  { %v937_v12 = vmax.f32 %v633_v27, 0.0  ;;  %v2609_v27 = vld [vmem:[%s3458_s0 + $0x1f8] sm:$0xff] }
  0xf9   :  { %v1061_v30 = vpack.c.bf16 %v937_v12, %v936_v34 }
  0xfd   :  { %v2994_v52 = vpop.f32.mrf.mxu3 }
  0xfe   :  { %v636_v33 = vpop.f32.mrf.mxu0  ;;  %v2972_v35 = vpop.f32.mrf.mxu1  ;;  %v1033_v43 = vmax.f32 %v2994_v52, 0.0 }
  0xff   :  { %v938_v11 = vmax.f32 %v636_v33, 0.0  ;;  %v1060_v33 = vpack.c.bf16 %v935_v26, %v934_v31 }
 0x101   :  { %675 = vmatmul.bf16.gmra.mxu0 %v2560_v32 }
 0x102   :  { %915 = vmatmul.bf16.gmra.mxu3 %v2608_v55 }
 0x105   :  { %v2999_v62 = vpop.f32.mrf.mxu3 }
 0x106   :  { %v638_v39 = vpop.f32.mrf.mxu0  ;;  %v2979_v41 = vpop.f32.mrf.mxu1 }
 0x107   :  { %v939_v0 = vmax.f32 %v638_v39, 0.0 }
 0x109   :  { %v1062_v16 = vpack.c.bf16 %v939_v0, %v938_v11  ;;  %v984_v11 = vmax.f32 %v2972_v35, 0.0  ;;  %v2564_v35 = vld [vmem:[%s3458_s0 + $0x90] sm:$0xff] }
 0x10d   :  { %v3012_v37 = vpop.f32.mrf.mxu3 }
 0x10e   :  { %v641_v48 = vpop.f32.mrf.mxu0  ;;  %v2992_v51 = vpop.f32.mrf.mxu1 }
 0x10f   :  { %v940_v58 = vmax.f32 %v641_v48, 0.0 }
 0x111   :  { %680 = vmatmul.bf16.gmra.mxu0 %v2561_v47  ;;  %v2563_v47 = vld [vmem:[%s3458_s0 + $0x88] sm:$0xff] }
 0x112   :  { %920 = vmatmul.bf16.gmra.mxu3 %v2609_v27 }
 0x115   :  { %v3019_v44 = vpop.f32.mrf.mxu3 }
 0x116   :  { %v643_v56 = vpop.f32.mrf.mxu0  ;;  %v758_v7 = vpop.f32.mrf.mxu1 }
 0x117   :  { %v941_v59 = vmax.f32 %v643_v56, 0.0  ;;  %v987_v63 = vmax.f32 %v758_v7, 0.0 }
 0x119   :  { %v1063_v3 = vpack.c.bf16 %v941_v59, %v940_v58 }
 0x11b   :  { %1141 = vmatpush.bf16.msrb.mxu1 %v1063_v3 }
 0x11d   :  { %v883_v58 = vpop.f32.mrf.mxu3 }
 0x11e   :  { %v646_v22 = vpop.f32.mrf.mxu0  ;;  %v761_v32 = vpop.f32.mrf.mxu1  ;;  %v1037_v57 = vmax.f32 %v883_v58, 0.0 }
 0x11f   :  { %1142 = vmatpush.bf16.msrb.mxu1 %v1062_v16  ;;  %v942_v23 = vmax.f32 %v646_v22, 0.0  ;;  %v988_v56 = vmax.f32 %v761_v32, 0.0  ;;  %v981_v22 = vmax.f32 %v2939_v18, 0.0 }
 0x121   :  { %685 = vmatmul.bf16.gmra.mxu0 %v2562_v20 }
 0x123   :  { %1143 = vmatpush.bf16.msrb.mxu1 %v1061_v30  ;;  %v1083_v30 = vpack.c.bf16 %v981_v22, %v980_v21 }
 0x125   :  { %v3039_v16 = vpop.f32.mrf.mxu3 }
 0x126   :  { %v648_v38 = vpop.f32.mrf.mxu0  ;;  %v763_v48 = vpop.f32.mrf.mxu1 }
 0x127   :  { %v943_v39 = vmax.f32 %v648_v38, 0.0  ;;  %1144 = vmatpush.bf16.msrb.mxu1 %v1060_v33  ;;  %v989_v59 = vmax.f32 %v763_v48, 0.0  ;;  %v976_v33 = vmax.f32 %v2887_v53, 0.0  ;;  %v1036_v53 = vmax.f32 %v3019_v44, 0.0  ;;  %v3072_v48 = vpop.f32.mrf.mxu2 }
 0x128   :  { %v1032_v44 = vmax.f32 %v2981_v42, 0.0  ;;  %v2592_v42 = vld [vmem:[%s3458_s0 + $0x170] sm:$0xff] }
 0x129   :  { %v3021_v45 = vpack.c.bf16 %v943_v39, %v942_v23  ;;  %v1087_v0 = vpack.c.bf16 %v989_v59, %v988_v56  ;;  %v2565_v39 = vld [vmem:[%s3458_s0 + $0x98] sm:$0xff]  ;;  %v1035_v56 = vmax.f32 %v3012_v37, 0.0  ;;  %v1111_v59 = vpack.c.bf16 %v1037_v57, %v1036_v53 }
 0x12a   :  { %v1031_v37 = vmax.f32 %v2974_v36, 0.0  ;;  %v1028_v36 = vmax.f32 %v2941_v19, 0.0  ;;  %v1024_v19 = vmax.f32 %v2896_v60, 0.0  ;;  %v2567_v60 = vld [vmem:[%s3458_s0 + $0xa8] sm:$0xff] }
 0x12b   :  { %1145 = vmatpush.bf16.msrb.mxu1 %v2920_v10  ;;  %v986_v10 = vmax.f32 %v2992_v51, 0.0  ;;  %v982_v51 = vmax.f32 %v2952_v24, 0.0  ;;  %v978_v24 = vmax.f32 %v2906_v1, 0.0  ;;  %v2591_v1 = vld [vmem:[%s3458_s0 + $0x168] sm:$0xff] }
 0x12d   :  { %v1086_v12 = vpack.c.bf16 %v987_v63, %v986_v10  ;;  %v3053_v26 = vpop.f32.mrf.mxu3  ;;  %v1080_v10 = vpack.c.bf16 %v975_v17, %v974_v13 }
 0x12e   :  { %v651_v55 = vpop.f32.mrf.mxu0 }
 0x12f   :  { %1146 = vmatpush.bf16.msrb.mxu1 %v2898_v61  ;;  %v944_v4 = vmax.f32 %v651_v55, 0.0  ;;  %v985_v61 = vmax.f32 %v2979_v41, 0.0  ;;  %v1034_v55 = vmax.f32 %v2999_v62, 0.0  ;;  %v1030_v62 = vmax.f32 %v2961_v29, 0.0 }
 0x131   :  { %690 = vmatmul.bf16.gmra.mxu0 %v2563_v47  ;;  %v1085_v7 = vpack.c.bf16 %v985_v61, %v984_v11  ;;  %v1110_v58 = vpack.c.bf16 %v1035_v56, %v1034_v55  ;;  %v2566_v11 = vld [vmem:[%s3458_s0 + $0xa0] sm:$0xff]  ;;  %v1108_v61 = vpack.c.bf16 %v1031_v37, %v1030_v62 }
 0x133   :  { %1147 = vmatpush.bf16.msrb.mxu1 %v2882_v50  ;;  %v2590_v50 = vld [vmem:[%s3458_s0 + $0x160] sm:$0xff] }
 0x134   :  { %825 = vmatmul.bf16.gmra.mxu2 %v2590_v50 }
 0x135   :  { %v3059_v18 = vpop.f32.mrf.mxu3 }
 0x136   :  { %v653_v3 = vpop.f32.mrf.mxu0 }
 0x137   :  { %v945_v6 = vmax.f32 %v653_v3, 0.0  ;;  %1148 = vmatpush.bf16.msrb.mxu1 %v2868_v40  ;;  %v983_v40 = vmax.f32 %v2959_v28, 0.0  ;;  %v979_v28 = vmax.f32 %v2913_v5, 0.0  ;;  %v1081_v5 = vpack.c.bf16 %v977_v14, %v976_v33 }
 0x139   :  { %v3041_v20 = vpack.c.bf16 %v945_v6, %v944_v4  ;;  %v1084_v34 = vpack.c.bf16 %v983_v40, %v982_v51  ;;  %v1082_v38 = vpack.c.bf16 %v979_v28, %v978_v24  ;;  %v3080_v4 = vpop.f32.mrf.mxu2  ;;  %v1109_v6 = vpack.c.bf16 %v1033_v43, %v1032_v44  ;;  %v3100_v51 = vpop.f32.mrf.mxu1 }
 0x13a   :  { %1149 = vmatmul.bf16.vlgmr.msrb.gmra.mxu1 %v1125_v9  ;;  %v1026_v40 = vmax.f32 %v2915_v8, 0.0  ;;  %v2593_v8 = vld [vmem:[%s3458_s0 + $0x178] sm:$0xff]  ;;  %v1023_v28 = vmax.f32 %v2889_v54, 0.0 }
 0x13b   :  { %1180 = vmatpush.bf16.msra.mxu1 %v1087_v0 }
 0x13d   :  { %v3076_v63 = vpop.f32.mrf.mxu3 }
 0x13e   :  { %v656_v41 = vpop.f32.mrf.mxu0 }
 0x13f   :  { %1181 = vmatpush.bf16.msra.mxu1 %v1086_v12  ;;  %v946_v27 = vmax.f32 %v656_v41, 0.0  ;;  %v1029_v12 = vmax.f32 %v2954_v25, 0.0  ;;  %v1025_v25 = vmax.f32 %v2908_v2, 0.0 }
 0x141   :  { %695 = vmatmul.bf16.gmra.mxu0 %v2564_v35  ;;  %v3098_v50 = vpop.f32.mrf.mxu2  ;;  %v1107_v35 = vpack.c.bf16 %v1029_v12, %v1028_v36  ;;  %v3112_v24 = vpop.f32.mrf.mxu1 }
 0x143   :  { %1182 = vmatpush.bf16.msra.mxu1 %v1085_v7  ;;  %v1027_v7 = vmax.f32 %v2932_v15, 0.0  ;;  %v1022_v15 = vmax.f32 %v2880_v49, 0.0 }
 0x144   :  { %830 = vmatmul.bf16.gmra.mxu2 %v2591_v1 }
 0x145   :  { %v3089_v52 = vpop.f32.mrf.mxu3  ;;  %v1106_v22 = vpack.c.bf16 %v1027_v7, %v1026_v40 }
 0x146   :  { %v658_v31 = vpop.f32.mrf.mxu0 }
 0x147   :  { %1183 = vmatpush.bf16.msra.mxu1 %v1084_v34  ;;  %v947_v32 = vmax.f32 %v658_v31, 0.0  ;;  %v1104_v31 = vpack.c.bf16 %v1023_v28, %v1022_v15 }
 0x149   :  { %v3061_v23 = vpack.c.bf16 %v947_v32, %v946_v27  ;;  %v3110_v34 = vpop.f32.mrf.mxu2  ;;  %v3126_v33 = vpop.f32.mrf.mxu1 }
 0x14b   :  { %1184 = vmatpush.bf16.msra.mxu1 %v1083_v30  ;;  %v1105_v30 = vpack.c.bf16 %v1025_v25, %v1024_v19 }
 0x14d   :  { %v3106_v21 = vpop.f32.mrf.mxu3 }
 0x14e   :  { %v661_v47 = vpop.f32.mrf.mxu0 }
 0x14f   :  { %1185 = vmatpush.bf16.msra.mxu1 %v1082_v38  ;;  %v948_v0 = vmax.f32 %v661_v47, 0.0  ;;  %v2568_v38 = vld [vmem:[%s3458_s0 + $0xb0] sm:$0xff] }
 0x151   :  { %700 = vmatmul.bf16.gmra.mxu0 %v2565_v39  ;;  %v3122_v27 = vpop.f32.mrf.mxu2  ;;  %v3133_v1 = vpop.f32.mrf.mxu1 }
 0x153   :  { %1186 = vmatpush.bf16.msra.mxu1 %v1081_v5 }
 0x154   :  { %835 = vmatmul.bf16.gmra.mxu2 %v2592_v42 }
 0x155   :  { %v3124_v32 = vpop.f32.mrf.mxu3 }
 0x156   :  { %v663_v46 = vpop.f32.mrf.mxu0 }
 0x157   :  { %1187 = vmatpush.bf16.msra.mxu1 %v1080_v10  ;;  %v949_v3 = vmax.f32 %v663_v46, 0.0 }
 0x159   :  { %v3084_v9 = vpack.c.bf16 %v949_v3, %v948_v0  ;;  %v803_v14 = vpop.f32.mrf.mxu2  ;;  %v3141_v17 = vpop.f32.mrf.mxu1 }
 0x15b   :  { %1219 = vmatpush.bf16.msrb.mxu1 %v1111_v59 }
 0x15d   :  { %v3128_v54 = vpop.f32.mrf.mxu3 }
 0x15e   :  { %v3094_v29 = vpop.f32.mrf.mxu0 }
 0x15f   :  { %1220 = vmatpush.bf16.msrb.mxu1 %v1110_v58 }
 0x161   :  { %705 = vmatmul.bf16.gmra.mxu0 %v2566_v11  ;;  %v3135_v39 = vpop.f32.mrf.mxu2  ;;  %v3145_v59 = vpop.f32.mrf.mxu1 }
 0x163   :  { %1221 = vmatpush.bf16.msrb.mxu1 %v1109_v6 }
 0x164   :  { %840 = vmatmul.bf16.gmra.mxu2 %v2593_v8 }
 0x165   :  { %v3137_v53 = vpop.f32.mrf.mxu3 }
 0x166   :  { %v3104_v41 = vpop.f32.mrf.mxu0 }
 0x167   :  { %1222 = vmatpush.bf16.msrb.mxu1 %v1108_v61 }
 0x169   :  { %v3139_v13 = vpop.f32.mrf.mxu2  ;;  %v3151_v11 = vpop.f32.mrf.mxu1 }
 0x16b   :  { %1223 = vmatpush.bf16.msrb.mxu1 %v1107_v35  ;;  %v951_v35 = vmax.f32 %v3104_v41, 0.0 }
 0x16d   :  { %v3143_v55 = vpop.f32.mrf.mxu3 }
 0x16e   :  { %v671_v2 = vpop.f32.mrf.mxu0 }
 0x16f   :  { %1224 = vmatpush.bf16.msrb.mxu1 %v1106_v22  ;;  %v952_v40 = vmax.f32 %v671_v2, 0.0  ;;  %v950_v22 = vmax.f32 %v3094_v29, 0.0 }
 0x171   :  { %710 = vmatmul.bf16.gmra.mxu0 %v2567_v60  ;;  %v811_v56 = vpop.f32.mrf.mxu2  ;;  %v1068_v8 = vpack.c.bf16 %v951_v35, %v950_v22  ;;  %v783_v15 = vpop.f32.mrf.mxu1  ;;  %v996_v35 = vmax.f32 %v3151_v11, 0.0 }
 0x172   :  { %v1008_v58 = vmax.f32 %v811_v56, 0.0  ;;  %v1004_v56 = vmax.f32 %v3122_v27, 0.0 }
 0x173   :  { %1225 = vmatpush.bf16.msrb.mxu1 %v1105_v30 }
 0x175   :  { %v3147_v3 = vpop.f32.mrf.mxu3 }
 0x176   :  { %v673_v49 = vpop.f32.mrf.mxu0 }
 0x177   :  { %1226 = vmatpush.bf16.msrb.mxu1 %v1104_v31  ;;  %v953_v61 = vmax.f32 %v673_v49, 0.0 }
 0x179   :  { %v813_v46 = vpop.f32.mrf.mxu2  ;;  %v1069_v19 = vpack.c.bf16 %v953_v61, %v952_v40 }
 0x17a   :  { %v1009_v0 = vmax.f32 %v813_v46, 0.0 }
 0x17c   :  { %v3149_v6 = vpack.c.bf16 %v1009_v0, %v1008_v58 }
 0x17d   :  { %v3154_v25 = vpop.f32.mrf.mxu3 }
 0x17e   :  { %v676_v5 = vpop.f32.mrf.mxu0 }
 0x17f   :  { %v954_v42 = vmax.f32 %v676_v5, 0.0 }
 0x181   :  { %715 = vmatmul.bf16.gmra.mxu0 %v2568_v38  ;;  %v816_v7 = vpop.f32.mrf.mxu2 }
 0x182   :  { %v1010_v31 = vmax.f32 %v816_v7, 0.0 }
 0x185   :  { %v3162_v41 = vpop.f32.mrf.mxu3 }
 0x186   :  { %v678_v57 = vpop.f32.mrf.mxu0 }
 0x187   :  { %v955_v62 = vmax.f32 %v678_v57, 0.0 }
 0x189   :  { %v1070_v36 = vpack.c.bf16 %v955_v62, %v954_v42  ;;  %v818_v49 = vpop.f32.mrf.mxu2  ;;  %v1126_v42 = vld.sshfl [vmem:[#allocation1 + $0x8] sm:$0xff pattern:$0x73625140] }
 0x18a   :  { %v1011_v38 = vmax.f32 %v818_v49, 0.0  ;;  %v992_v49 = vmax.f32 %v3126_v33, 0.0  ;;  %v1050_v33 = vmax.f32 %v3162_v41, 0.0 }
 0x18c   :  { %v3159_v5 = vpack.c.bf16 %v1011_v38, %v1010_v31  ;;  %v993_v38 = vmax.f32 %v3133_v1, 0.0 }
 0x18d   :  { %v918_v0 = vpop.f32.mrf.mxu3 }
 0x18e   :  { %v681_v47 = vpop.f32.mrf.mxu0 }
 0x18f   :  { %v956_v44 = vmax.f32 %v681_v47, 0.0  ;;  %v786_v47 = vpop.f32.mrf.mxu1 }
 0x191   :  { %v821_v29 = vpop.f32.mrf.mxu2 }
 0x196   :  { %v683_v10 = vpop.f32.mrf.mxu0 }
 0x197   :  { %v957_v43 = vmax.f32 %v683_v10, 0.0  ;;  %v1005_v10 = vmax.f32 %v803_v14, 0.0  ;;  %v788_v27 = vpop.f32.mrf.mxu1 }
 0x198   :  { %v999_v40 = vmax.f32 %v788_v27, 0.0 }
 0x199   :  { %v1071_v37 = vpack.c.bf16 %v957_v43, %v956_v44  ;;  %v1002_v44 = vmax.f32 %v3098_v50, 0.0  ;;  %v1003_v43 = vmax.f32 %v3110_v34, 0.0  ;;  %v1095_v58 = vpack.c.bf16 %v1005_v10, %v1004_v56 }
 0x19a   :  { %v1001_v50 = vmax.f32 %v3080_v4, 0.0  ;;  %v991_v10 = vmax.f32 %v3112_v24, 0.0  ;;  %v1047_v24 = vmax.f32 %v3143_v55, 0.0  ;;  %v1040_v55 = vmax.f32 %v3059_v18, 0.0  ;;  %v1055_v18 = vld [vmem:[%s3459_s1 + $0x8] sm:$0xff] }
 0x19b   :  { %1154 = vmatpush.bf16.msrb.mxu2 %v1071_v37  ;;  %v1012_v37 = vmax.f32 %v821_v29, 0.0  ;;  %v1094_v34 = vpack.c.bf16 %v1003_v43, %v1002_v44  ;;  %v1089_v29 = vpack.c.bf16 %v993_v38, %v992_v49  ;;  %v1051_v44 = vmax.f32 %v918_v0, 0.0  ;;  %1124 = vst [vmem:[#allocation1 + $0x20] ss:$4 sm:$0xff] %v1055_v18 }
 0x19e   :  { %v686_v12 = vpop.f32.mrf.mxu0 }
 0x19f   :  { %1155 = vmatpush.bf16.msrb.mxu2 %v1070_v36  ;;  %v958_v30 = vmax.f32 %v686_v12, 0.0  ;;  %v998_v12 = vmax.f32 %v786_v47, 0.0 }
 0x1a1   :  { %v1092_v22 = vpack.c.bf16 %v999_v40, %v998_v12 }
 0x1a3   :  { %1156 = vmatpush.bf16.msrb.mxu2 %v1069_v19  ;;  %v997_v19 = vmax.f32 %v783_v15, 0.0 }
 0x1a5   :  { %v1091_v4 = vpack.c.bf16 %v997_v19, %v996_v35 }
 0x1a6   :  { %v688_v28 = vpop.f32.mrf.mxu0 }
 0x1a7   :  { %v959_v60 = vmax.f32 %v688_v28, 0.0  ;;  %1157 = vmatpush.bf16.msrb.mxu2 %v1068_v8  ;;  %v921_v8 = vpop.f32.mrf.mxu3  ;;  %v994_v28 = vmax.f32 %v3141_v17, 0.0 }
 0x1a8   :  { %v1052_v47 = vmax.f32 %v921_v8, 0.0 }
 0x1a9   :  { %v3157_v2 = vpack.c.bf16 %v959_v60, %v958_v30 }
 0x1ab   :  { %1158 = vmatpush.bf16.msrb.mxu2 %v3084_v9 }
 0x1ae   :  { %v691_v57 = vpop.f32.mrf.mxu0 }
 0x1af   :  { %1159 = vmatpush.bf16.msrb.mxu2 %v3061_v23  ;;  %v960_v9 = vmax.f32 %v691_v57, 0.0  ;;  %v823_v23 = vpop.f32.mrf.mxu2  ;;  %v923_v15 = vpop.f32.mrf.mxu3 }
 0x1b0   :  { %v1013_v61 = vmax.f32 %v823_v23, 0.0  ;;  %v1053_v17 = vmax.f32 %v923_v15, 0.0 }
 0x1b2   :  { %v3174_v36 = vpack.c.bf16 %v1013_v61, %v1012_v37  ;;  %v1119_v1 = vpack.c.bf16 %v1053_v17, %v1052_v47  ;;  %v1046_v37 = vmax.f32 %v3137_v53, 0.0  ;;  %v1045_v61 = vmax.f32 %v3128_v54, 0.0 }
 0x1b3   :  { %1160 = vmatpush.bf16.msrb.mxu2 %v3041_v20  ;;  %v1000_v20 = vmax.f32 %v3072_v48, 0.0  ;;  %v995_v48 = vmax.f32 %v3145_v59, 0.0  ;;  %v990_v59 = vmax.f32 %v3100_v51, 0.0  ;;  %v1039_v54 = vmax.f32 %v3053_v26, 0.0 }
 0x1b4   :  { %v1116_v41 = vpack.c.bf16 %v1047_v24, %v1046_v37 }
 0x1b5   :  { %v1090_v57 = vpack.c.bf16 %v995_v48, %v994_v28  ;;  %v1088_v43 = vpack.c.bf16 %v991_v10, %v990_v59  ;;  %v1129_v48 = vld.sshfl [vmem:[#allocation1 + $0x20] sm:$0xff pattern:$0x73625140] }
 0x1b6   :  { %v693_v46 = vpop.f32.mrf.mxu0 }
 0x1b7   :  { %v961_v62 = vmax.f32 %v693_v46, 0.0  ;;  %1161 = vmatpush.bf16.msrb.mxu2 %v3021_v45  ;;  %v1093_v45 = vpack.c.bf16 %v1001_v50, %v1000_v20  ;;  %v1048_v46 = vmax.f32 %v3147_v3, 0.0  ;;  %v1042_v3 = vmax.f32 %v3089_v52, 0.0 }
 0x1b8   :  { %v1041_v50 = vmax.f32 %v3076_v63, 0.0 }
 0x1b9   :  { %v3170_v14 = vpack.c.bf16 %v961_v62, %v960_v9  ;;  %v1049_v9 = vmax.f32 %v3154_v25, 0.0  ;;  %v1118_v62 = vpack.c.bf16 %v1051_v44, %v1050_v33  ;;  %v1043_v25 = vmax.f32 %v3106_v21, 0.0  ;;  %v1132_v33 = vld.sshfl [vmem:[#allocation1 + $0x38] sm:$0xff pattern:$0x73625140] }
 0x1ba   :  { %1162 = vmatmul.bf16.vlgmr.msrb.gmra.mxu2 %v1126_v42  ;;  %v1044_v42 = vmax.f32 %v3124_v32, 0.0  ;;  %v1038_v32 = vmax.f32 %v3039_v16, 0.0  ;;  %v1113_v40 = vpack.c.bf16 %v1041_v50, %v1040_v55  ;;  %v2620_v50 = vld [vmem:[%s3461_s3 + $0x10] sm:$0xff] }
 0x1bb   :  { %1193 = vmatpush.bf16.msra.mxu2 %v1095_v58  ;;  %v3188_v58 = vpop.f32.mrf.mxu2  ;;  %v1117_v23 = vpack.c.bf16 %v1049_v9, %v1048_v46  ;;  %v1131_v46 = vld.sshfl [vmem:[#allocation1 + $0x30] sm:$0xff pattern:$0x73625140] }
 0x1bc   :  { %v1115_v20 = vpack.c.bf16 %v1045_v61, %v1044_v42  ;;  %v1112_v52 = vpack.c.bf16 %v1039_v54, %v1038_v32  ;;  %v1127_v9 = vld.sshfl [vmem:[#allocation1 + $0x10] sm:$0xff pattern:$0x73625140]  ;;  %v1014_v37 = vmax.f32 %v3188_v58, 0.0  ;;  %v2625_v58 = vld [vmem:[%s3461_s3 + $0x38] sm:$0xff]  ;;  %v2619_v32 = vld [vmem:[%s3461_s3 + $0x8] sm:$0xff] }
 0x1be   :  { %v696_v7 = vpop.f32.mrf.mxu0 }
 0x1bf   :  { %1194 = vmatpush.bf16.msra.mxu2 %v1094_v34  ;;  %v962_v60 = vmax.f32 %v696_v7, 0.0  ;;  %v1114_v34 = vpack.c.bf16 %v1043_v25, %v1042_v3  ;;  %v1130_v3 = vld.sshfl [vmem:[#allocation1 + $0x28] sm:$0xff pattern:$0x73625140]  ;;  %v2622_v25 = vld [vmem:[%s3461_s3 + $0x20] sm:$0xff] }
 0x1c3   :  { %1195 = vmatpush.bf16.msra.mxu2 %v1093_v45  ;;  %v3196_v27 = vpop.f32.mrf.mxu2 }
 0x1c6   :  { %v698_v30 = vpop.f32.mrf.mxu0 }
 0x1c7   :  { %1196 = vmatpush.bf16.msra.mxu2 %v1092_v22  ;;  %v963_v31 = vmax.f32 %v698_v30, 0.0 }
 0x1c9   :  { %v3181_v11 = vpack.c.bf16 %v963_v31, %v962_v60  ;;  %v1128_v31 = vld.sshfl [vmem:[#allocation1 + $0x18] sm:$0xff pattern:$0x73625140] }
 0x1ca   :  { %1188 = vmatmul.bf16.vlgmr.msra.gmra.mxu1 %v1128_v31 }
 0x1cb   :  { %1197 = vmatpush.bf16.msra.mxu2 %v1091_v4  ;;  %v831_v12 = vpop.f32.mrf.mxu2 }
 0x1ce   :  { %v3184_v56 = vpop.f32.mrf.mxu0 }
 0x1cf   :  { %1198 = vmatpush.bf16.msra.mxu2 %v1090_v57 }
 0x1d3   :  { %1199 = vmatpush.bf16.msra.mxu2 %v1089_v29  ;;  %v833_v21 = vpop.f32.mrf.mxu2  ;;  %v964_v29 = vmax.f32 %v3184_v56, 0.0  ;;  %v1150_v56 = vpop.f32.mrf.mxu1 }
 0x1d6   :  { %v703_v51 = vpop.f32.mrf.mxu0 }
 0x1d7   :  { %1200 = vmatpush.bf16.msra.mxu2 %v1088_v43  ;;  %v965_v38 = vmax.f32 %v703_v51, 0.0  ;;  %v1017_v51 = vmax.f32 %v833_v21, 0.0 }
 0x1d9   :  { %v1075_v47 = vpack.c.bf16 %v965_v38, %v964_v29  ;;  %v2631_v38 = vld [vmem:[%s3461_s3 + $0x68] sm:$0xff] }
 0x1da   :  { %1201 = vmatmul.bf16.vlgmr.msra.gmra.mxu2 %v1129_v48  ;;  %1227 = vmatmul.bf16.vlgmr.msrb.gmra.mxu1 %v1131_v46  ;;  %v2633_v48 = vld [vmem:[%s3461_s3 + $0x78] sm:$0xff] }
 0x1db   :  { %1232 = vmatpush.bf16.msrb.mxu2 %v1119_v1  ;;  %v836_v35 = vpop.f32.mrf.mxu2  ;;  %1454 = vmatpush.bf16.msra.mxu1 %v2633_v48 }
 0x1dc   :  { %v1018_v44 = vmax.f32 %v836_v35, 0.0 }
 0x1de   :  { %v706_v0 = vpop.f32.mrf.mxu0 }
 0x1df   :  { %1233 = vmatpush.bf16.msrb.mxu2 %v1118_v62  ;;  %v966_v49 = vmax.f32 %v706_v0, 0.0  ;;  %v1016_v62 = vmax.f32 %v831_v12, 0.0  ;;  %v1007_v0 = vmax.f32 %v3139_v13, 0.0 }
 0x1e1   :  { %v1101_v24 = vpack.c.bf16 %v1017_v51, %v1016_v62 }
 0x1e3   :  { %1234 = vmatpush.bf16.msrb.mxu2 %v1117_v23  ;;  %v838_v16 = vpop.f32.mrf.mxu2  ;;  %v1152_v23 = vpop.f32.mrf.mxu1 }
 0x1e4   :  { %v1019_v1 = vmax.f32 %v838_v16, 0.0 }
 0x1e6   :  { %v708_v53 = vpop.f32.mrf.mxu0 }
 0x1e7   :  { %1235 = vmatpush.bf16.msrb.mxu2 %v1116_v41  ;;  %v967_v30 = vmax.f32 %v708_v53, 0.0 }
 0x1e9   :  { %v1076_v57 = vpack.c.bf16 %v967_v30, %v966_v49  ;;  %v2695_v30 = vld [vmem:[%s3462_s4] ss:$0 sm:$0xff] }
 0x1eb   :  { %1236 = vmatpush.bf16.msrb.mxu2 %v1115_v20  ;;  %v841_v15 = vpop.f32.mrf.mxu2  ;;  %v2621_v20 = vld [vmem:[%s3461_s3 + $0x18] sm:$0xff] }
 0x1ec   :  { %v1020_v59 = vmax.f32 %v841_v15, 0.0 }
 0x1ee   :  { %v711_v45 = vpop.f32.mrf.mxu0 }
 0x1ef   :  { %1237 = vmatpush.bf16.msrb.mxu2 %v1114_v34  ;;  %v968_v4 = vmax.f32 %v711_v45, 0.0  ;;  %v2618_v45 = vld [vmem:[%s3461_s3] sm:$0xff] }
 0x1f3   :  { %1238 = vmatpush.bf16.msrb.mxu2 %v1113_v40  ;;  %v843_v17 = vpop.f32.mrf.mxu2 }
 0x1f4   :  { %v1021_v10 = vmax.f32 %v843_v17, 0.0 }
 0x1f6   :  { %v713_v7 = vpop.f32.mrf.mxu0  ;;  %v1103_v43 = vpack.c.bf16 %v1021_v10, %v1020_v59  ;;  %v2630_v10 = vld [vmem:[%s3461_s3 + $0x60] sm:$0xff] }
 0x1f7   :  { %1239 = vmatpush.bf16.msrb.mxu2 %v1112_v52  ;;  %v969_v28 = vmax.f32 %v713_v7, 0.0 }
 0x1f9   :  { %v1077_v60 = vpack.c.bf16 %v969_v28, %v968_v4 }
 0x1fa   :  { %1240 = vmatmul.bf16.vlgmr.msrb.gmra.mxu2 %v1132_v33 }
 0x1fe   :  { %v716_v19 = vpop.f32.mrf.mxu0 }
 0x1ff   :  { %v970_v22 = vmax.f32 %v716_v19, 0.0 }
 0x206   :  { %v718_v63 = vpop.f32.mrf.mxu0 }
 0x207   :  { %v971_v8 = vmax.f32 %v718_v63, 0.0 }
 0x209   :  { %v1078_v26 = vpack.c.bf16 %v971_v8, %v970_v22 }
 0x20b   :  { %1168 = vmatpush.bf16.msrb.mxu3 %v1078_v26  ;;  %v1245_v26 = vlaneseq }
 0x20d   :  { %v3248_v4 = vshrl.u32 %v1245_v26, 7 }
 0x20f   :  { %1169 = vmatpush.bf16.msrb.mxu3 %v1077_v60  ;;  %v2632_v60 = vld [vmem:[%s3461_s3 + $0x70] sm:$0xff]  ;;  %vm1247_vm0 = vcmp.lt.s32.totalorder %v3248_v4, 2  ;;  %v2704_v4 = vld [vmem:[%s3462_s4 + $0xa] ss:$0 sm:$0xff] }
 0x210   :  { %1455 = vmatpush.bf16.msra.mxu1 %v2632_v60 }
 0x213   :  { %1170 = vmatpush.bf16.msrb.mxu3 %v1076_v57 }
 0x214   :  { %1456 = vmatpush.bf16.msra.mxu1 %v2631_v38  ;;  %v2696_v38 = vld [vmem:[%s3462_s4 + $0x1] ss:$0 sm:$0xff] }
 0x217   :  { %1171 = vmatpush.bf16.msrb.mxu3 %v1075_v47 }
 0x218   :  { %1457 = vmatpush.bf16.msra.mxu1 %v2630_v10  ;;  %v2638_v10 = vld [vmem:[%s3461_s3 + $0x120] sm:$0xff] }
 0x21b   :  { %1172 = vmatpush.bf16.msrb.mxu3 %v3181_v11  ;;  %v1102_v11 = vpack.c.bf16 %v1019_v1, %v1018_v44 }
 0x21f   :  { %1173 = vmatpush.bf16.msrb.mxu3 %v3170_v14  ;;  %v1015_v14 = vmax.f32 %v3196_v27, 0.0 }
 0x221   :  { %v1100_v41 = vpack.c.bf16 %v1015_v14, %v1014_v37  ;;  %v2628_v37 = vld [vmem:[%s3461_s3 + $0x50] sm:$0xff] }
 0x223   :  { %1174 = vmatpush.bf16.msrb.mxu3 %v3157_v2  ;;  %v1006_v2 = vmax.f32 %v3135_v39, 0.0 }
 0x225   :  { %v1096_v61 = vpack.c.bf16 %v1007_v0, %v1006_v2 }
 0x226   :  { %1175 = vmatmul.bf16.vlgmr.msrb.gmra.mxu3 %v1127_v9  ;;  %v2629_v9 = vld [vmem:[%s3461_s3 + $0x58] sm:$0xff] }
 0x227   :  { %1206 = vmatpush.bf16.msra.mxu3 %v1103_v43  ;;  %1458 = vmatpush.bf16.msra.mxu1 %v2629_v9  ;;  %v2634_v9 = vld [vmem:[%s3461_s3 + $0x100] sm:$0xff] }
 0x22b   :  { %1207 = vmatpush.bf16.msra.mxu3 %v1102_v11  ;;  %1459 = vmatpush.bf16.msra.mxu1 %v2628_v37 }
 0x22f   :  { %1208 = vmatpush.bf16.msra.mxu3 %v1101_v24 }
 0x233   :  { %1209 = vmatpush.bf16.msra.mxu3 %v1100_v41  ;;  %v2627_v41 = vld [vmem:[%s3461_s3 + $0x48] sm:$0xff] }
 0x234   :  { %1460 = vmatpush.bf16.msra.mxu1 %v2627_v41 }
 0x237   :  { %1210 = vmatpush.bf16.msra.mxu3 %v3174_v36 }
 0x23b   :  { %1211 = vmatpush.bf16.msra.mxu3 %v3159_v5  ;;  %v2624_v5 = vld [vmem:[%s3461_s3 + $0x30] sm:$0xff] }
 0x23d   :  { %v1163_v42 = vpop.f32.mrf.mxu2 }
 0x23e   :  { %v1164_v27 = vadd.f32 %v1163_v42, %v1150_v56  ;;  %v2626_v42 = vld [vmem:[%s3461_s3 + $0x40] sm:$0xff] }
 0x23f   :  { %1212 = vmatpush.bf16.msra.mxu3 %v3149_v6  ;;  %v2623_v6 = vld [vmem:[%s3461_s3 + $0x28] sm:$0xff]  ;;  %1461 = vmatpush.bf16.msra.mxu1 %v2626_v42 }
 0x243   :  { %1213 = vmatpush.bf16.msra.mxu3 %v1096_v61  ;;  %v2657_v61 = vld [vmem:[%s3461_s3 + $0xb8] sm:$0xff] }
 0x244   :  { %1773 = vmatpush.bf16.msrb.mxu1 %v2657_v61  ;;  %v2665_v61 = vld [vmem:[%s3461_s3 + $0xf8] sm:$0xff] }
 0x245   :  { %v1165_v39 = vpop.f32.mrf.mxu2 }
 0x246   :  { %1214 = vmatmul.bf16.vlgmr.msra.gmra.mxu3 %v1130_v3 }
 0x247   :  { %1335 = vmatpush.bf16.msrb.mxu3 %v2625_v58  ;;  %v1189_v13 = vpop.f32.mrf.mxu1 }
 0x24b   :  { %1336 = vmatpush.bf16.msrb.mxu3 %v2624_v5 }
 0x24f   :  { %1337 = vmatpush.bf16.msrb.mxu3 %v2623_v6  ;;  %v1191_v53 = vpop.f32.mrf.mxu1 }
 0x253   :  { %1338 = vmatpush.bf16.msrb.mxu3 %v2622_v25 }
 0x257   :  { %1339 = vmatpush.bf16.msrb.mxu3 %v2621_v20  ;;  %v1228_v34 = vpop.f32.mrf.mxu1 }
 0x25b   :  { %1340 = vmatpush.bf16.msrb.mxu3 %v2620_v50  ;;  %v2655_v50 = vld [vmem:[%s3461_s3 + $0xa8] sm:$0xff] }
 0x25d   :  { %v1202_v36 = vpop.f32.mrf.mxu2 }
 0x25f   :  { %1341 = vmatpush.bf16.msrb.mxu3 %v2619_v32  ;;  %v1230_v54 = vpop.f32.mrf.mxu1 }
 0x263   :  { %1342 = vmatpush.bf16.msrb.mxu3 %v2618_v45 }
 0x265   :  { %v1204_v55 = vpop.f32.mrf.mxu2 }
 0x27d   :  { %v1241_v12 = vpop.f32.mrf.mxu2 }
 0x285   :  { %v1243_v52 = vpop.f32.mrf.mxu2 }
 0x2a9   :  { %v1176_v40 = vpop.f32.mrf.mxu3 }
 0x2aa   :  { %v1177_v7 = vadd.f32 %v1176_v40, %v1164_v27  ;;  %v2654_v40 = vld [vmem:[%s3461_s3 + $0xa0] sm:$0xff] }
 0x2ac   :  { %v1190_v35 = vadd.f32 %v1189_v13, %v1177_v7  ;;  %v2653_v7 = vld [vmem:[%s3461_s3 + $0x98] sm:$0xff] }
 0x2ae   :  { %v1203_v19 = vadd.f32 %v1202_v36, %v1190_v35  ;;  %v2656_v36 = vld [vmem:[%s3461_s3 + $0xb0] sm:$0xff] }
 0x2af   :  { %1774 = vmatpush.bf16.msrb.mxu1 %v2656_v36 }
 0x2b1   :  { %v1178_v21 = vpop.f32.mrf.mxu3 }
 0x2b3   :  { %1775 = vmatpush.bf16.msrb.mxu1 %v2655_v50 }
 0x2b7   :  { %1776 = vmatpush.bf16.msrb.mxu1 %v2654_v40 }
 0x2bb   :  { %1777 = vmatpush.bf16.msrb.mxu1 %v2653_v7 }
 0x2c9   :  { %v1215_v18 = vpop.f32.mrf.mxu3 }
 0x2ca   :  { %v1216_v63 = vadd.f32 %v1215_v18, %v1203_v19  ;;  %v2652_v19 = vld [vmem:[%s3461_s3 + $0x90] sm:$0xff] }
 0x2cb   :  { %1778 = vmatpush.bf16.msrb.mxu1 %v2652_v19 }
 0x2cc   :  { %v1229_v22 = vadd.f32 %v1228_v34, %v1216_v63  ;;  %v2651_v63 = vld [vmem:[%s3461_s3 + $0x88] sm:$0xff] }
 0x2ce   :  { %v1242_v8 = vadd.f32 %v1241_v12, %v1229_v22  ;;  %v2650_v22 = vld [vmem:[%s3461_s3 + $0x80] sm:$0xff] }
 0x2cf   :  { %1779 = vmatpush.bf16.msrb.mxu1 %v2651_v63 }
 0x2d0   :  { %v3242_v16 = vpack.c.bf16 %v1242_v8, %v1242_v8 }
 0x2d1   :  { %v1217_v28 = vpop.f32.mrf.mxu3 }
 0x2d2   :  { %1343 = vmatmul.bf16.vlgmr.msrb.gmra.mxu3 %v3242_v16 }
 0x2d3   :  { %1780 = vmatpush.bf16.msrb.mxu1 %v2650_v22  ;;  %v2660_v22 = vld [vmem:[%s3461_s3 + $0xd0] sm:$0xff] }
 0x355   :  { %v1344_v31 = vpop.f32.mrf.mxu3 }
 0x356   :  { %v1345_v49 = vadd.f32 %v2695_v30, %v1344_v31  ;;  %v2641_v30 = vld [vmem:[%s3461_s3 + $0x138] sm:$0xff]  ;;  %v2640_v31 = vld [vmem:[%s3461_s3 + $0x130] sm:$0xff] }
 0x357   :  { %1555 = vmatpush.bf16.msra.mxu2 %v2641_v30  ;;  %v2659_v30 = vld [vmem:[%s3461_s3 + $0xc8] sm:$0xff] }
 0x358   :  { %v1348_v57 = vsel %vm1247_vm0, %v1345_v49, 0.0  ;;  %v1357_v15 = vsel %vm1247_vm0, 0.0, %v1345_v49 }
 0x359   :  { %v1350_v29 = vsel %vm1349_vm1, %v1348_v57, 0.0  ;;  %v1358_v47 = vsel %vm1349_vm1, %v1357_v15, 0.0 }
 0x35a   :  { %v1351_v17 = vrot.slane %v1350_v29, 4  ;;  %v1359_v59 = vrot.slane %v1358_v47, 4 }
 0x35b   :  { %1556 = vmatpush.bf16.msra.mxu2 %v2640_v31 }
 0x35c   :  { %v1352_v33 = vadd.f32 %v1351_v17, %v1350_v29  ;;  %v1360_v44 = vadd.f32 %v1359_v59, %v1358_v47  ;;  %v2697_v29 = vld [vmem:[%s3462_s4 + $0x2] ss:$0 sm:$0xff]  ;;  %v2639_v47 = vld [vmem:[%s3461_s3 + $0x128] sm:$0xff] }
 0x35d   :  { %v1346_v1 = vpop.f32.mrf.mxu3 }
 0x35e   :  { %v1353_v43 = vrot.slane %v1352_v33, 2  ;;  %v1361_v46 = vrot.slane %v1360_v44, 2  ;;  %v2637_v1 = vld [vmem:[%s3461_s3 + $0x118] sm:$0xff] }
 0x35f   :  { %1557 = vmatpush.bf16.msra.mxu2 %v2639_v47 }
 0x360   :  { %v1354_v56 = vadd.f32 %v1353_v43, %v1352_v33  ;;  %v1362_v62 = vadd.f32 %v1361_v46, %v1360_v44  ;;  %v2636_v43 = vld [vmem:[%s3461_s3 + $0x110] sm:$0xff]  ;;  %v2635_v46 = vld [vmem:[%s3461_s3 + $0x108] sm:$0xff] }
 0x362   :  { %v1355_v51 = vrot.slane %v1354_v56, 1  ;;  %v1363_v11 = vrot.slane %v1362_v62, 1 }
 0x363   :  { %1558 = vmatpush.bf16.msra.mxu2 %v2638_v10 }
 0x364   :  { %v1356_v14 = vadd.f32 %v1355_v51, %v1354_v56  ;;  %v1364_v24 = vadd.f32 %v1363_v11, %v1362_v62  ;;  %v2698_v56 = vld [vmem:[%s3462_s4 + $0x3] ss:$0 sm:$0xff] }
 0x366   :  { %v1365_v23 = vsel %vm1247_vm0, %v1356_v14, %v1364_v24  ;;  %v2699_v14 = vld [vmem:[%s3462_s4 + $0x4] ss:$0 sm:$0xff] }
 0x367   :  { %v1366_v2 = vmul.f32 0.5, %v1365_v23  ;;  %1559 = vmatpush.bf16.msra.mxu2 %v2637_v1 }
 0x369   :  { %v1367_v0 = vsub.f32 %v1345_v49, %v1366_v2 }
 0x36b   :  { %v1368_v58 = vmul.f32 %v1367_v0, %v1367_v0  ;;  %1560 = vmatpush.bf16.msra.mxu2 %v2636_v43 }
 0x36d   :  { %v1369_v27 = vsel %vm1247_vm0, %v1368_v58, 0.0  ;;  %v1377_v3 = vsel %vm1247_vm0, 0.0, %v1368_v58 }
 0x36e   :  { %v1370_v5 = vsel %vm1349_vm1, %v1369_v27, 0.0  ;;  %v1378_v39 = vsel %vm1349_vm1, %v1377_v3, 0.0 }
 0x36f   :  { %v1371_v13 = vrot.slane %v1370_v5, 4  ;;  %v1379_v6 = vrot.slane %v1378_v39, 4  ;;  %1561 = vmatpush.bf16.msra.mxu2 %v2635_v46 }
 0x371   :  { %v1372_v25 = vadd.f32 %v1371_v13, %v1370_v5  ;;  %v1380_v20 = vadd.f32 %v1379_v6, %v1378_v39  ;;  %v2664_v6 = vld [vmem:[%s3461_s3 + $0xf0] sm:$0xff] }
 0x373   :  { %v1373_v53 = vrot.slane %v1372_v25, 2  ;;  %v1381_v55 = vrot.slane %v1380_v20, 2  ;;  %1562 = vmatpush.bf16.msra.mxu2 %v2634_v9  ;;  %v2700_v9 = vld [vmem:[%s3462_s4 + $0x5] ss:$0 sm:$0xff] }
 0x375   :  { %v1374_v34 = vadd.f32 %v1373_v53, %v1372_v25  ;;  %v1382_v12 = vadd.f32 %v1381_v55, %v1380_v20  ;;  %v2663_v55 = vld [vmem:[%s3461_s3 + $0xe8] sm:$0xff] }
 0x377   :  { %v1375_v32 = vrot.slane %v1374_v34, 1  ;;  %v1383_v54 = vrot.slane %v1382_v12, 1  ;;  %1891 = vmatpush.bf16.msrb.mxu2 %v2665_v61 }
 0x379   :  { %v1376_v45 = vadd.f32 %v1375_v32, %v1374_v34  ;;  %v1384_v52 = vadd.f32 %v1383_v54, %v1382_v12  ;;  %v2662_v54 = vld [vmem:[%s3461_s3 + $0xe0] sm:$0xff] }
 0x37b   :  { %v1385_v21 = vsel %vm1247_vm0, %v1376_v45, %v1384_v52  ;;  %1892 = vmatpush.bf16.msrb.mxu2 %v2664_v6  ;;  %v2661_v52 = vld [vmem:[%s3461_s3 + $0xd8] sm:$0xff] }
 0x37c   :  { %v1386_v35 = vmul.f32 0.5, %v1385_v21 }
 0x37e   :  { %v1387_v18 = vadd.f32 1e-05, %v1386_v35 }
 0x37f   :  { %1893 = vmatpush.bf16.msrb.mxu2 %v2663_v55 }
 0x380   :  { %2707 = vrsqrt.f32 %v1387_v18  ;;  %vm1394_vm3 = vweird.f32 %v1387_v18 }
 0x383   :  { %1894 = vmatpush.bf16.msrb.mxu2 %v2662_v54 }
 0x386   :  { %v2708_v8 = vpop.eup %2707 }
 0x387   :  { %v1389_v28 = vmul.f32 %v2708_v8, %v1387_v18  ;;  %vm1395_vm2 = vweird.f32 %v2708_v8  ;;  %1895 = vmatpush.bf16.msrb.mxu2 %v2661_v52 }
 0x388   :  { %vm1396_vm4 = vmor %vm1394_vm3, %vm1395_vm2 }
 0x389   :  { %v1390_v26 = vmul.f32 %v2708_v8, %v1389_v28 }
 0x38b   :  { %v1391_v48 = vmul.f32 0.5, %v1390_v26  ;;  %1896 = vmatpush.bf16.msrb.mxu2 %v2660_v22 }
 0x38d   :  { %v1392_v60 = vsub.f32 1.5, %v1391_v48 }
 0x38f   :  { %v1393_v49 = vmul.f32 %v2708_v8, %v1392_v60  ;;  %1897 = vmatpush.bf16.msrb.mxu2 %v2659_v30 }
 0x391   :  { %v1397_v57 = vsel %vm1396_vm4, %v2708_v8, %v1393_v49 }
 0x392   :  { %v1398_v15 = vmul.f32 %v1397_v57, %v1367_v0  ;;  %v2658_v57 = vld [vmem:[%s3461_s3 + $0xc0] sm:$0xff] }
 0x393   :  { %1898 = vmatpush.bf16.msrb.mxu2 %v2658_v57 }
 0x394   :  { %v1400_v17 = vmul.f32 %v2696_v38, %v1398_v15 }
 0x396   :  { %v1402_v59 = vadd.f32 %v2697_v29, %v1400_v17 }
 0x398   :  { %v1403_v33 = vmax.f32 %v1402_v59, 0.0 }
 0x39a   :  { %v1404_v44 = vpack.c.bf16 %v1403_v33, %v1403_v33 }
 0x39c   :  { %1462 = vmatmul.bf16.vlgmr.msra.gmra.mxu1 %v1404_v44 }
 0x3ac   :  { %1781 = vmatmul.bf16.vlgmr.msrb.gmra.mxu1 %v3242_v16 }
 0x419   :  { %v1463_v62 = vpop.f32.mrf.mxu1 }
 0x41a   :  { %v1464_v51 = vadd.f32 %v2698_v56, %v1463_v62 }
 0x41c   :  { %v1505_v11 = vpack.c.bf16 %v1464_v51, %v1464_v51  ;;  %v2701_v51 = vld [vmem:[%s3462_s4 + $0x6] ss:$0 sm:$0xff] }
 0x41e   :  { %1563 = vmatmul.bf16.vlgmr.msra.gmra.mxu2 %v1505_v11 }
 0x421   :  { %v1465_v37 = vpop.f32.mrf.mxu1 }
 0x429   :  { %v1782_v24 = vpop.f32.mrf.mxu1 }
 0x42a   :  { %v1783_v16 = vadd.f32 %v2699_v14, %v1782_v24 }
 0x42c   :  { %v1786_v23 = vsel %vm1247_vm0, %v1783_v16, 0.0  ;;  %v1794_v41 = vsel %vm1247_vm0, 0.0, %v1783_v16 }
 0x42d   :  { %v1787_v2 = vsel %vm1349_vm1, %v1786_v23, 0.0  ;;  %v1795_v0 = vsel %vm1349_vm1, %v1794_v41, 0.0 }
 0x42e   :  { %v1788_v42 = vrot.slane %v1787_v2, 4  ;;  %v1796_v58 = vrot.slane %v1795_v0, 4 }
 0x430   :  { %v1789_v27 = vadd.f32 %v1788_v42, %v1787_v2  ;;  %v1797_v3 = vadd.f32 %v1796_v58, %v1795_v0 }
 0x431   :  { %v1784_v5 = vpop.f32.mrf.mxu1 }
 0x432   :  { %v1790_v39 = vrot.slane %v1789_v27, 2  ;;  %v1798_v13 = vrot.slane %v1797_v3, 2 }
 0x434   :  { %v1791_v36 = vadd.f32 %v1790_v39, %v1789_v27  ;;  %v1799_v25 = vadd.f32 %v1798_v13, %v1797_v3  ;;  %v2649_v3 = vld [vmem:[%s3461_s3 + $0x178] sm:$0xff] }
 0x435   :  { %1673 = vmatpush.bf16.msra.mxu3 %v2649_v3 }
 0x436   :  { %v1792_v20 = vrot.slane %v1791_v36, 1  ;;  %v1800_v53 = vrot.slane %v1799_v25, 1 }
 0x438   :  { %v1793_v50 = vadd.f32 %v1792_v20, %v1791_v36  ;;  %v1801_v34 = vadd.f32 %v1800_v53, %v1799_v25  ;;  %v2648_v25 = vld [vmem:[%s3461_s3 + $0x170] sm:$0xff] }
 0x439   :  { %1674 = vmatpush.bf16.msra.mxu3 %v2648_v25 }
 0x43a   :  { %v1802_v12 = vsel %vm1247_vm0, %v1793_v50, %v1801_v34  ;;  %v2647_v34 = vld [vmem:[%s3461_s3 + $0x168] sm:$0xff] }
 0x43b   :  { %v1803_v32 = vmul.f32 0.5, %v1802_v12 }
 0x43d   :  { %v1804_v40 = vsub.f32 %v1783_v16, %v1803_v32  ;;  %v2702_v16 = vld [vmem:[%s3462_s4 + $0x8] ss:$0 sm:$0xff]  ;;  %1675 = vmatpush.bf16.msra.mxu3 %v2647_v34 }
 0x43f   :  { %v1805_v45 = vmul.f32 %v1804_v40, %v1804_v40 }
 0x441   :  { %v1806_v21 = vsel %vm1247_vm0, %v1805_v45, 0.0  ;;  %v1814_v7 = vsel %vm1247_vm0, 0.0, %v1805_v45  ;;  %v2646_v45 = vld [vmem:[%s3461_s3 + $0x160] sm:$0xff] }
 0x442   :  { %v1807_v35 = vsel %vm1349_vm1, %v1806_v21, 0.0  ;;  %v1815_v19 = vsel %vm1349_vm1, %v1814_v7, 0.0  ;;  %1676 = vmatpush.bf16.msra.mxu3 %v2646_v45  ;;  %v2645_v7 = vld [vmem:[%s3461_s3 + $0x158] sm:$0xff] }
 0x443   :  { %v1808_v18 = vrot.slane %v1807_v35, 4  ;;  %v1816_v63 = vrot.slane %v1815_v19, 4 }
 0x445   :  { %v1809_v8 = vadd.f32 %v1808_v18, %v1807_v35  ;;  %v1817_v28 = vadd.f32 %v1816_v63, %v1815_v19 }
 0x446   :  { %1677 = vmatpush.bf16.msra.mxu3 %v2645_v7 }
 0x447   :  { %v1810_v26 = vrot.slane %v1809_v8, 2  ;;  %v1818_v48 = vrot.slane %v1817_v28, 2 }
 0x449   :  { %v1811_v60 = vadd.f32 %v1810_v26, %v1809_v8  ;;  %v1819_v31 = vadd.f32 %v1818_v48, %v1817_v28  ;;  %v2644_v28 = vld [vmem:[%s3461_s3 + $0x150] sm:$0xff] }
 0x44a   :  { %1678 = vmatpush.bf16.msra.mxu3 %v2644_v28 }
 0x44b   :  { %v1812_v49 = vrot.slane %v1811_v60, 1  ;;  %v1820_v38 = vrot.slane %v1819_v31, 1 }
 0x44d   :  { %v1813_v15 = vadd.f32 %v1812_v49, %v1811_v60  ;;  %v1821_v29 = vadd.f32 %v1820_v38, %v1819_v31  ;;  %v2643_v31 = vld [vmem:[%s3461_s3 + $0x148] sm:$0xff] }
 0x44e   :  { %1679 = vmatpush.bf16.msra.mxu3 %v2643_v31 }
 0x44f   :  { %v1822_v47 = vsel %vm1247_vm0, %v1813_v15, %v1821_v29  ;;  %v2642_v29 = vld [vmem:[%s3461_s3 + $0x140] sm:$0xff] }
 0x450   :  { %v1823_v17 = vmul.f32 0.5, %v1822_v47 }
 0x452   :  { %v1824_v59 = vadd.f32 1e-05, %v1823_v17  ;;  %1680 = vmatpush.bf16.msra.mxu3 %v2642_v29 }
 0x454   :  { %2709 = vrsqrt.f32 %v1824_v59  ;;  %vm1831_vm6 = vweird.f32 %v1824_v59 }
 0x45a   :  { %v2710_v10 = vpop.eup %2709 }
 0x45b   :  { %v1826_v33 = vmul.f32 %v2710_v10, %v1824_v59  ;;  %vm1832_vm5 = vweird.f32 %v2710_v10 }
 0x45c   :  { %vm1833_vm7 = vmor %vm1831_vm6, %vm1832_vm5 }
 0x45d   :  { %v1827_v44 = vmul.f32 %v2710_v10, %v1826_v33 }
 0x45f   :  { %v1828_v1 = vmul.f32 0.5, %v1827_v44 }
 0x461   :  { %v1829_v43 = vsub.f32 1.5, %v1828_v1 }
 0x463   :  { %v1830_v46 = vmul.f32 %v2710_v10, %v1829_v43 }
 0x465   :  { %v1834_v56 = vsel %vm1833_vm7, %v2710_v10, %v1830_v46 }
 0x466   :  { %v1835_v62 = vmul.f32 %v1834_v56, %v1804_v40 }
 0x468   :  { %v1837_v11 = vmul.f32 %v2700_v9, %v1835_v62  ;;  %v2703_v62 = vld [vmem:[%s3462_s4 + $0x9] ss:$0 sm:$0xff] }
 0x46a   :  { %v1839_v37 = vadd.f32 %v2701_v51, %v1837_v11 }
 0x46c   :  { %v1840_v14 = vmax.f32 %v1839_v37, 0.0 }
 0x46e   :  { %v1841_v24 = vpack.c.bf16 %v1840_v14, %v1840_v14 }
 0x470   :  { %1899 = vmatmul.bf16.vlgmr.msrb.gmra.mxu2 %v1841_v24 }
 0x4a1   :  { %v1564_v23 = vpop.f32.mrf.mxu2 }
 0x4a2   :  { %v1565_v41 = vadd.f32 %v2702_v16, %v1564_v23 }
 0x4a4   :  { %v1568_v2 = vsel %vm1247_vm0, %v1565_v41, 0.0  ;;  %v1576_v0 = vsel %vm1247_vm0, 0.0, %v1565_v41 }
 0x4a5   :  { %v1569_v42 = vsel %vm1349_vm1, %v1568_v2, 0.0  ;;  %v1577_v58 = vsel %vm1349_vm1, %v1576_v0, 0.0  ;;  %v2706_v2 = vld [vmem:[%s3462_s4 + $0xb] ss:$0 sm:$0xff] }
 0x4a6   :  { %v1570_v61 = vrot.slane %v1569_v42, 4  ;;  %v1578_v27 = vrot.slane %v1577_v58, 4 }
 0x4a8   :  { %v1571_v5 = vadd.f32 %v1570_v61, %v1569_v42  ;;  %v1579_v39 = vadd.f32 %v1578_v27, %v1577_v58  ;;  %v2705_v42 = vld [vmem:[%s3462_s4 + $0x7] ss:$0 sm:$0xff] }
 0x4a9   :  { %v1566_v13 = vpop.f32.mrf.mxu2 }
 0x4aa   :  { %v1572_v6 = vrot.slane %v1571_v5, 2  ;;  %v1580_v36 = vrot.slane %v1579_v39, 2 }
 0x4ac   :  { %v1573_v20 = vadd.f32 %v1572_v6, %v1571_v5  ;;  %v1581_v53 = vadd.f32 %v1580_v36, %v1579_v39 }
 0x4ae   :  { %v1574_v55 = vrot.slane %v1573_v20, 1  ;;  %v1582_v50 = vrot.slane %v1581_v53, 1 }
 0x4b0   :  { %v1575_v12 = vadd.f32 %v1574_v55, %v1573_v20  ;;  %v1583_v32 = vadd.f32 %v1582_v50, %v1581_v53 }
 0x4b2   :  { %v1584_v54 = vsel %vm1247_vm0, %v1575_v12, %v1583_v32 }
 0x4b3   :  { %v1585_v40 = vmul.f32 0.5, %v1584_v54 }
 0x4b5   :  { %v1586_v52 = vsub.f32 %v1565_v41, %v1585_v40 }
 0x4b7   :  { %v1587_v21 = vmul.f32 %v1586_v52, %v1586_v52 }
 0x4b9   :  { %v1588_v35 = vsel %vm1247_vm0, %v1587_v21, 0.0  ;;  %v1596_v19 = vsel %vm1247_vm0, 0.0, %v1587_v21 }
 0x4ba   :  { %v1589_v18 = vsel %vm1349_vm1, %v1588_v35, 0.0  ;;  %v1597_v63 = vsel %vm1349_vm1, %v1596_v19, 0.0 }
 0x4bb   :  { %v1590_v22 = vrot.slane %v1589_v18, 4  ;;  %v1598_v8 = vrot.slane %v1597_v63, 4 }
 0x4bd   :  { %v1591_v26 = vadd.f32 %v1590_v22, %v1589_v18  ;;  %v1599_v48 = vadd.f32 %v1598_v8, %v1597_v63 }
 0x4bf   :  { %v1592_v30 = vrot.slane %v1591_v26, 2  ;;  %v1600_v60 = vrot.slane %v1599_v48, 2 }
 0x4c1   :  { %v1593_v49 = vadd.f32 %v1592_v30, %v1591_v26  ;;  %v1601_v38 = vadd.f32 %v1600_v60, %v1599_v48 }
 0x4c3   :  { %v1594_v57 = vrot.slane %v1593_v49, 1  ;;  %v1602_v15 = vrot.slane %v1601_v38, 1 }
 0x4c5   :  { %v1595_v47 = vadd.f32 %v1594_v57, %v1593_v49  ;;  %v1603_v17 = vadd.f32 %v1602_v15, %v1601_v38 }
 0x4c7   :  { %v1604_v59 = vsel %vm1247_vm0, %v1595_v47, %v1603_v17 }
 0x4c8   :  { %v1605_v10 = vmul.f32 0.5, %v1604_v59 }
 0x4ca   :  { %v1606_v33 = vadd.f32 1e-05, %v1605_v10 }
 0x4cc   :  { %2711 = vrsqrt.f32 %v1606_v33  ;;  %vm1613_vm9 = vweird.f32 %v1606_v33 }
 0x4d2   :  { %v2712_v44 = vpop.eup %2711 }
 0x4d3   :  { %v1608_v1 = vmul.f32 %v2712_v44, %v1606_v33  ;;  %vm1614_vm8 = vweird.f32 %v2712_v44 }
 0x4d4   :  { %vm1615_vm10 = vmor %vm1613_vm9, %vm1614_vm8 }
 0x4d5   :  { %v1609_v43 = vmul.f32 %v2712_v44, %v1608_v1 }
 0x4d7   :  { %v1610_v46 = vmul.f32 0.5, %v1609_v43 }
 0x4d9   :  { %v1611_v9 = vsub.f32 1.5, %v1610_v46 }
 0x4db   :  { %v1612_v56 = vmul.f32 %v2712_v44, %v1611_v9 }
 0x4dd   :  { %v1616_v51 = vsel %vm1615_vm10, %v2712_v44, %v1612_v56 }
 0x4de   :  { %v1617_v11 = vmul.f32 %v1616_v51, %v1586_v52 }
 0x4e0   :  { %v1619_v37 = vmul.f32 %v2703_v62, %v1617_v11 }
 0x4e2   :  { %v1621_v14 = vadd.f32 %v2704_v4, %v1619_v37 }
 0x4e4   :  { %v1622_v24 = vmax.f32 %v1621_v14, 0.0 }
 0x4e6   :  { %v1623_v16 = vpack.c.bf16 %v1622_v24, %v1622_v24 }
 0x4e8   :  { %1681 = vmatmul.bf16.vlgmr.msra.gmra.mxu3 %v1623_v16 }
 0x4f3   :  { %v1900_v23 = vpop.f32.mrf.mxu2 }
 0x4f4   :  { %v1901_v27 = vadd.f32 %v2705_v42, %v1900_v23 }
 0x4f6   :  { %v1921_v39 = vmul.f32 %v1901_v27, %v1901_v27 }
 0x4f8   :  { %v1922_v13 = vsel %vm1349_vm1, %v1921_v39, 0.0 }
 0x4fb   :  { %v1902_v41 = vpop.f32.mrf.mxu2 }
 0x56b   :  { %v1682_v0 = vpop.f32.mrf.mxu3 }
 0x56c   :  { %v1683_v58 = vadd.f32 %v2706_v2, %v1682_v0 }
 0x56e   :  { %v1904_v61 = vmul.f32 %v1683_v58, %v1683_v58 }
 0x570   :  { %v1905_v3 = vsel %vm1349_vm1, %v1904_v61, 0.0  ;;  %vm1941_vm1 = vcmask 1041408  }
 0x571   :  { %1906 = vadd.xlane.f32.xlu0 %v1905_v3 }
 0x573   :  { %v1684_v5 = vpop.f32.mrf.mxu3 }
 0x579   :  { %1923 = vadd.xlane.f32.xlu0 %v1922_v13 }
 0x5e4   :  { %v1907_v6 = vpop.xlane.xlu0 %1906 }
 0x5e5   :  { %v1908_v36 = vmax.f32 %v1907_v6, 1e-24 }
 0x5e7   :  { %2713 = vrsqrt.f32 %v1908_v36  ;;  %vm1915_vm12 = vweird.f32 %v1908_v36 }
 0x5ec   :  { %v1924_v25 = vpop.xlane.xlu0 %1923 }
 0x5ed   :  { %v2714_v20 = vpop.eup %2713  ;;  %v1925_v53 = vmax.f32 %v1924_v25, 1e-24 }
 0x5ee   :  { %v1910_v55 = vmul.f32 %v2714_v20, %v1908_v36  ;;  %vm1916_vm11 = vweird.f32 %v2714_v20 }
 0x5ef   :  { %2715 = vrsqrt.f32 %v1925_v53  ;;  %vm1917_vm13 = vmor %vm1915_vm12, %vm1916_vm11  ;;  %vm1932_vm15 = vweird.f32 %v1925_v53 }
 0x5f0   :  { %v1911_v50 = vmul.f32 %v2714_v20, %v1910_v55 }
 0x5f2   :  { %v1912_v34 = vmul.f32 0.5, %v1911_v50 }
 0x5f4   :  { %v1913_v12 = vsub.f32 1.5, %v1912_v34 }
 0x5f5   :  { %v2716_v32 = vpop.eup %2715 }
 0x5f6   :  { %v1914_v54 = vmul.f32 %v2714_v20, %v1913_v12  ;;  %v1927_v40 = vmul.f32 %v2716_v32, %v1925_v53  ;;  %vm1933_vm14 = vweird.f32 %v2716_v32 }
 0x5f7   :  { %vm1934_vm0 = vmor %vm1932_vm15, %vm1933_vm14 }
 0x5f8   :  { %v1918_v45 = vsel %vm1917_vm13, %v2714_v20, %v1914_v54  ;;  %v1928_v52 = vmul.f32 %v2716_v32, %v1927_v40 }
 0x5f9   :  { %v1919_v21 = vmul.f32 %v1918_v45, %v1683_v58 }
 0x5fa   :  { %v1929_v7 = vmul.f32 0.5, %v1928_v52 }
 0x5fb   :  { %1920 = vst [vmem:[#allocation2] sm:$0xf] %v1919_v21 }
 0x5fc   :  { %v1930_v35 = vsub.f32 1.5, %v1929_v7 }
 0x5fe   :  { %v1931_v19 = vmul.f32 %v2716_v32, %v1930_v35 }
 0x600   :  { %v1935_v18 = vsel %vm1934_vm0, %v2716_v32, %v1931_v19 }
 0x601   :  { %v1936_v63 = vmul.f32 %v1935_v18, %v1901_v27 }
 0x602   :  { %v1938_v22 = vld [vmem:[#allocation2] sm:$0x3]  ;;  %v1952_v30 = vld [vmem:[#allocation2 + $0x2] sm:$0x3] }
 0x603   :  { %1937 = vst [vmem:[#allocation3] sm:$0xf] %v1936_v63 }
 0x60a   :  { %v1939_v8 = vld [vmem:[#allocation3 + $0x2] sm:$0x3]  ;;  %v1953_v48 = vld [vmem:[#allocation3] sm:$0x3] }
 0x60b   :  { %v1940_v28 = vmul.f32 %v1939_v8, %v1938_v22  ;;  %v1954_v60 = vmul.f32 %v1953_v48, %v1952_v30 }
 0x60d   :  { %v1942_v26 = vsel %vm1941_vm1, %v1940_v28, 0.0  ;;  %v1955_v31 = vsel %vm1941_vm1, %v1954_v60, 0.0 }
 0x60e   :  { %1943 = vadd.xlane.f32.xlu1 %v1942_v26 }
 0x616   :  { %1956 = vadd.xlane.f32.xlu1 %v1955_v31 }
 0x681   :  { %v1944_v49 = vpop.xlane.xlu1 %1943 }
 0x682   :  { %v1945_v38 = vrot.slane %v1944_v49, 4 }
 0x684   :  { %v1946_v57 = vadd.f32 %v1945_v38, %v1944_v49 }
 0x686   :  { %v1947_v15 = vrot.slane %v1946_v57, 2 }
 0x688   :  { %v1948_v29 = vadd.f32 %v1947_v15, %v1946_v57 }
 0x689   :  { %v1957_v47 = vpop.xlane.xlu1 %1956 }
 0x68a   :  { %v1958_v17 = vrot.slane %v1957_v47, 4  ;;  %v1949_v59 = vrot.slane %v1948_v29, 1 }
 0x68c   :  { %v1959_v10 = vadd.f32 %v1958_v17, %v1957_v47  ;;  %v1950_v33 = vadd.f32 %v1949_v59, %v1948_v29 }
 0x68e   :  { %v1960_v44 = vrot.slane %v1959_v10, 2  ;;  %2690 = vpush %v1950_v33 }
 0x690   :  { %v1961_v1 = vadd.f32 %v1960_v44, %v1959_v10 }
 0x692   :  { %v1962_v43 = vrot.slane %v1961_v1, 1 }
 0x694   :  { %v1963_v46 = vadd.f32 %v1962_v43, %v1961_v1 }
 0x696   :  { %2692 = vpush %v1963_v46 }
 0x6bf   :  { %s2691_s4 = spop %2690 }
 0x6c7   :  { %s2693_s15 = spop %2692 }
 0x6c8   :  { %s1965_s16 = sadd.f32 %s2693_s15, %s2691_s4 }
 0x6ca   :  { %s1966_s17 = smul.f32 2.0, %s1965_s16 }
 0x6cc   :  { %s1967_s21 = ssub.f32 8.0, %s1966_s17 }
 0x6ce   :  { %s1968_s22 = smul.f32 0.5, %s1967_s21 }
 0x6d0   :  { %1970 = sst [smem:[#allocation4]] %s1968_s22 }
 0x6d1   :  { %1979 = dma.smem_to_hbm %s2731_s23, 16, %s1977_s20, [#allocation5]  }
 0x6d2   :  { %2729 = dma.done.wait [#allocation5], 16  }
 0x6d3   :  { %2730 = vsyncadd [#allocation5], 4294967280 }
 0x6d4   :  { %1984 = sfence }
 0x6d5   :  { %1985 = vsyncpa [#allocation5], 1 }

</bundles_post_ra>
